<compile_context>
chip_gen: v7x
topology: tpu7x:2x2x1
jax: 0.10.0
libtpu: 0.0.40
codegen_flags: <defaults>
</compile_context>

<pallas_src>
import jax
import jax.numpy as jnp
import numpy as np
from jax.experimental import pallas as pl
from jax.experimental.pallas import tpu as pltpu


def _make_prm_kernel(hw, use_mxu):
    """hw: spatial size h*w; use_mxu: run the channel contraction on the MXU."""
    inv_hw = 1.0 / hw
    # NOTE: hw == 1 -> var = 0, std = 1e-5 (reference ddof=1 would give NaN/inf).
    inv_hwm1 = 1.0 / (hw - 1) if hw > 1 else 0.0

    def prm_kernel(scal_ref, planes_ref, pgrp_ref, x_ref, out_ref):
        # scal_ref  : SMEM (4,)        [theta0, theta1, -1/(2*scale^2), 0.5/(scale*sqrt(2pi))]
        # planes_ref: VMEM (1, 2, hw)  [row coords, col coords] (f32)
        # pgrp_ref  : VMEM (TB, 1, 4)  [weight, bias, one, zero] per block slice (f32)
        # x_ref/out_ref: (TB, cg, hw)  one block of (batch, group) slices, native dtype
        xv = x_ref[...]                                        # (TB, cg, hw), native dtype

        theta0 = scal_ref[0]
        theta1 = scal_ref[1]
        neg_inv_2s2 = scal_ref[2]
        half_norm = scal_ref[3]

        planes = planes_ref[...]
        row_pl = planes[:, 0:1, :]                             # (1, 1, hw) f32
        col_pl = planes[:, 1:2, :]

        pg = pgrp_ref[...]                                     # (TB, 1, 4) f32
        w_aff = pg[:, :, 0:1]                                  # (TB, 1, 1)
        b_aff = pg[:, :, 1:2]
        one_p = pg[:, :, 2:3]
        zero_p = pg[:, :, 3:4]

        s_idx = jax.lax.broadcasted_iota(jnp.int32, (1, 1, hw), 2)

        # --- query position: first argmax over spatial of the channel-sum (f32 accum) ---
        sumv = jnp.sum(xv.astype(jnp.float32), axis=1, keepdims=True)      # (TB, 1, hw)
        maxv = jnp.max(sumv, axis=2, keepdims=True)                        # (TB, 1, 1)
        idx = jnp.min(jnp.where(sumv == maxv, s_idx, hw),
                      axis=2, keepdims=True)                               # (TB, 1, 1) int32
        onehot = s_idx == idx                                              # (TB, 1, hw) bool

        # query-position row/col via masked reductions of coord planes (no int div/mod)
        p_row = jnp.sum(jnp.where(onehot, row_pl, 0.0), axis=2, keepdims=True)  # (TB,1,1)
        p_col = jnp.sum(jnp.where(onehot, col_pl, 0.0), axis=2, keepdims=True)

        # --- gaussian distance weighting (constants pre-folded, EUP exp) ---
        z_r = (row_pl - p_row) * theta0                                    # (TB, 1, hw) f32
        z_c = (col_pl - p_col) * theta1
        dist = (jnp.exp(z_r * z_r * neg_inv_2s2) +
                jnp.exp(z_c * z_c * neg_inv_2s2)) * half_norm              # 0.5*(pdf_r+pdf_c)

        # --- similarities; fold per-group zero/one into the keys ---
        if use_mxu:
            # Channel contraction on the MXU: (TB, 2, cg) @ (TB, cg, hw) -> (TB, 2, hw)
            qv = jnp.sum(jnp.where(onehot, xv, 0).astype(jnp.float32), axis=2)  # (TB, cg)
            gap = jnp.sum(xv.astype(jnp.float32), axis=2) * inv_hw              # (TB, cg)
            k_max = qv * pg[:, :, 3]                                             # (TB, cg)
            k_gap = gap * pg[:, :, 2]
            keys = jnp.stack([k_max, k_gap], axis=1).astype(xv.dtype)            # (TB, 2, cg)
            sims = jax.lax.dot_general(
                keys, xv,
                dimension_numbers=(((2,), (1,)), ((0,), (0,))),
                preferred_element_type=jnp.float32)                              # (TB, 2, hw)
            sim_max = sims[:, 0:1, :]
            sim_gap = sims[:, 1:2, :]
        else:
            # Small cg: VPU multiply in native dtype, reduce in f32.
            qv = jnp.sum(jnp.where(onehot, xv, 0).astype(jnp.float32),
                         axis=2, keepdims=True)                                  # (TB, cg, 1)
            gap = jnp.sum(xv.astype(jnp.float32), axis=2, keepdims=True) * inv_hw
            k_max = (qv * zero_p).astype(xv.dtype)                               # (TB, cg, 1)
            k_gap = (gap * one_p).astype(xv.dtype)
            sim_max = jnp.sum((xv * k_max).astype(jnp.float32), axis=1, keepdims=True)
            sim_gap = jnp.sum((xv * k_gap).astype(jnp.float32), axis=1, keepdims=True)

        similarity = sim_max * dist + sim_gap                                    # (TB, 1, hw) f32

        # --- whiten (unbiased std) via fused sum-of-squares, affine, gate ---
        mean = jnp.sum(similarity, axis=2, keepdims=True) * inv_hw
        sumsq = jnp.sum(similarity * similarity, axis=2, keepdims=True)
        var = jnp.maximum(sumsq - float(hw) * mean * mean, 0.0) * inv_hwm1
        std = jnp.sqrt(var) + 1e-5                                               # (TB, 1, 1)
        ctx = (similarity - mean) * (w_aff / std) + b_aff                        # (TB, 1, hw)

        gate = jax.nn.sigmoid(ctx).astype(xv.dtype)
        out_ref[...] = (xv * gate).astype(out_ref.dtype)

    return prm_kernel


def _vmem_capacity_bytes():
    """Physical VMEM per TensorCore (v5e/v6e 128 MiB, v7x 64 MiB); safe fallback."""
    try:
        cap = getattr(pltpu.get_tpu_info(), "vmem_capacity_bytes", None)
        if cap:
            return int(cap)
    except Exception:
        pass
    return 128 * 1024 * 1024


def _choose_block_batch(b, g, cg, hw, itemsize, budget):
    """Pick TB = g*k (k | b): biggest block within `budget`, preferring a grid with
    >=4 even steps (so v7x's 2 TCs each get >=2 pipelined steps), else >=2 steps.

    Footprint per (batch,group) slice: in+out DMA double-buffered (4*itemsize) plus
    ~3 block-sized f32 kernel temporaries (12 bytes)."""
    per_slice = cg * hw * (4 * itemsize + 3 * 4)
    feasible = [k for k in range(1, b + 1)
                if b % k == 0 and g * k * per_slice <= budget]
    if not feasible:
        # TODO(synk): add a spatial/channel-split fallback instead of overshooting VMEM
        # when a single group's (cg, hw) slice exceeds the budget.
        return g
    steps = lambda k: b // k
    pref = [k for k in feasible if steps(k) >= 4 and steps(k) % 2 == 0]
    if not pref:
        pref = [k for k in feasible if steps(k) >= 2]
    if not pref:
        pref = feasible
    return g * max(pref)


def prm_layer_pallas(x, weight, bias, one_p, zero_p, theta, scale, groups=8):
    b, c, h, w = x.shape
    g = groups
    assert c % g == 0, "channels must be divisible by groups"
    cg = c // g
    hw = h * w
    bg = b * g

    x_r = x.reshape(bg, cg, hw)                        # no padding: last dim = full hw

    vmem_cap = _vmem_capacity_bytes()
    block_budget = int(vmem_cap * 0.30)                # ~38 MiB on 128 MiB parts, ~19 MiB on v7x
    vmem_limit = int(vmem_cap * 0.75)

    itemsize = jnp.dtype(x.dtype).itemsize
    tb = _choose_block_batch(b, g, cg, hw, itemsize, block_budget)
    grid = (bg // tb,)

    # Coordinate planes (loop-invariant, precomputed once in the wrapper).
    s = jnp.arange(hw, dtype=jnp.int32)
    row_pl = (s // w).astype(jnp.float32)
    col_pl = (s % w).astype(jnp.float32)
    planes = jnp.stack([row_pl, col_pl], axis=0)[None]                    # (1, 2, hw)

    # Per-slice group params tiled to the block batch (blocks are group-aligned,
    # so the same table is valid for every grid step).
    reps = tb // g
    pgrp = jnp.stack(
        [jnp.tile(weight.reshape(-1).astype(jnp.float32), reps),
         jnp.tile(bias.reshape(-1).astype(jnp.float32), reps),
         jnp.tile(one_p.reshape(-1).astype(jnp.float32), reps),
         jnp.tile(zero_p.reshape(-1).astype(jnp.float32), reps)],
        axis=-1)[:, None, :]                                              # (tb, 1, 4)

    th = theta.reshape(-1).astype(jnp.float32)
    sc = scale.reshape(-1).astype(jnp.float32)[0]
    scal = jnp.stack([th[0], th[1],
                      -1.0 / (2.0 * sc * sc),
                      0.5 / (sc * jnp.sqrt(2.0 * jnp.pi))]).astype(jnp.float32)   # (4,)

    use_mxu = cg >= 128
    kernel = _make_prm_kernel(hw, use_mxu)

    out = pl.pallas_call(
        kernel,
        out_shape=jax.ShapeDtypeStruct((bg, cg, hw), x.dtype),
        grid=grid,
        in_specs=[
            pl.BlockSpec(memory_space=pltpu.MemorySpace.SMEM),            # global scalars
            pl.BlockSpec((1, 2, hw), lambda i: (0, 0, 0)),                # coord planes
            pl.BlockSpec((tb, 1, 4), lambda i: (0, 0, 0)),                # per-group params
            pl.BlockSpec((tb, cg, hw), lambda i: (i, 0, 0)),              # x block
        ],
        out_specs=pl.BlockSpec((tb, cg, hw), lambda i: (i, 0, 0)),
        compiler_params=pltpu.CompilerParams(
            dimension_semantics=("parallel",),
            vmem_limit_bytes=vmem_limit,
        ),
    )(scal, planes, pgrp, x_r)

    return out.reshape(b, c, h, w)


def prm_layer_reference(x, weight, bias, one_p, zero_p, theta, scale, groups=8):
    # Pure-JAX reference mirroring the PyTorch forward, for verification.
    b, c, h, w = x.shape
    g = groups
    cg = c // g
    hw = h * w
    xv = x.reshape(b * g, cg, hw)
    hp = jax.lax.Precision.HIGHEST

    sumv = xv.sum(axis=1)                             # (bg, hw)
    idx = jnp.argmax(sumv, axis=1)                    # (bg,)
    p_row = idx // w
    p_col = idx % w
    qv = jnp.take_along_axis(xv, idx[:, None, None], axis=2)[..., 0]   # (bg, cg)
    gap = xv.mean(axis=2)                                              # (bg, cg)

    sim_max = jnp.einsum("bcs,bc->bs", xv, qv, precision=hp)           # (bg, hw)
    sim_gap = jnp.einsum("bcs,bc->bs", xv, gap, precision=hp)          # (bg, hw)

    s = jnp.arange(hw)
    row = s // w
    col = s % w
    z_row = jnp.abs(row[None, :] - p_row[:, None]).astype(x.dtype) * theta[0]
    z_col = jnp.abs(col[None, :] - p_col[:, None]).astype(x.dtype) * theta[1]
    pdf = lambda z: jnp.exp(-(z * z) / (2.0 * scale[0] ** 2)) / (scale[0] * jnp.sqrt(2.0 * jnp.pi))
    dist = 0.5 * (pdf(z_row) + pdf(z_col))            # (bg, hw)

    sim_max = (sim_max * dist).reshape(b, g, hw)
    sim_gap = sim_gap.reshape(b, g, hw)
    similarity = sim_max * zero_p[None, :, None] + sim_gap * one_p[None, :, None]

    ctx = similarity - similarity.mean(axis=2, keepdims=True)
    std = jnp.std(ctx, axis=2, keepdims=True, ddof=1) + 1e-5
    ctx = ctx / std
    ctx = ctx * weight[None, :, None] + bias[None, :, None]
    ctx = jnp.broadcast_to(ctx.reshape(b, g, 1, hw), (b, g, cg, hw)).reshape(b, c, h, w)
    return x * jax.nn.sigmoid(ctx)


def _make_inputs(key, B, C, H, W, GROUPS):
    kx, kw, kb, k1, k0, kt, ks = jax.random.split(key, 7)
    x = jax.random.normal(kx, (B, C, H, W), dtype=jnp.float32)
    weight = jax.random.normal(kw, (GROUPS,), jnp.float32) * 0.5
    bias = jax.random.normal(kb, (GROUPS,), jnp.float32) * 0.5 + 1.0
    one_p = jax.random.normal(k1, (GROUPS,), jnp.float32) * 0.5 + 1.0
    zero_p = jax.random.normal(k0, (GROUPS,), jnp.float32) * 0.5
    theta = jax.random.uniform(kt, (2,), jnp.float32)
    scale = jax.random.uniform(ks, (1,), jnp.float32) * 0.5 + 0.75
    return x, weight, bias, one_p, zero_p, theta, scale


if __name__ == "__main__":
    GROUPS = 8
    key = jax.random.PRNGKey(0)
    k_small, k_wide = jax.random.split(key)

    # Case 1: 14x14 spatial (hw=196, not a multiple of 128), cg=2 -> VPU similarity path.
    args = _make_inputs(k_small, 2, 16, 14, 14, GROUPS)
    out = jax.block_until_ready(prm_layer_pallas(*args, groups=GROUPS))
    ref = jax.block_until_ready(prm_layer_reference(*args, groups=GROUPS))
    np.testing.assert_allclose(np.asarray(out), np.asarray(ref), rtol=1e-3, atol=1e-3)

    # Case 2: wide channels (cg=128) -> MXU similarity path (looser tol: MXU f32 rounding).
    args_w = _make_inputs(k_wide, 2, 1024, 7, 7, GROUPS)
    out_w = jax.block_until_ready(prm_layer_pallas(*args_w, groups=GROUPS))
    ref_w = jax.block_until_ready(prm_layer_reference(*args_w, groups=GROUPS))
    np.testing.assert_allclose(np.asarray(out_w), np.asarray(ref_w), rtol=1e-2, atol=1e-2)

    # bf16 smoke run (compile/run check for the reduced-f32-working-set path).
    x, weight, bias, one_p, zero_p, theta, scale = args
    _ = jax.block_until_ready(
        prm_layer_pallas(x.astype(jnp.bfloat16), weight, bias, one_p, zero_p,
                         theta, scale, groups=GROUPS))

    print("KERNEL_OK")
</pallas_src>

<mosaic_0001>
module attributes {stable_mosaic.version = 11 : i64} {
  func.func @prm_kernel(%arg0: i32, %arg1: memref<4xf32, #tpu.memory_space<smem>>, %arg2: memref<1x2x196xf32, #tpu.memory_space<vmem>>, %arg3: memref<8x1x4xf32, #tpu.memory_space<vmem>>, %arg4: memref<8x2x196xf32, #tpu.memory_space<vmem>>, %arg5: memref<8x2x196xf32, #tpu.memory_space<vmem>>) attributes {dimension_semantics = [#tpu.dimension_semantics<parallel>], iteration_bounds = array<i64: 2>, scalar_prefetch = 0 : i64, scratch_operands = 0 : i64, tpu.core_type = #tpu.core_type<tc>, window_params = [{transform_indices = @transform_0, window_bounds = array<i64: 4>}, {pipeline_mode = #tpu.pipeline_mode<synchronous>, transform_indices = @transform_1, window_bounds = array<i64: 1, 2, 196>}, {pipeline_mode = #tpu.pipeline_mode<synchronous>, transform_indices = @transform_2, window_bounds = array<i64: 8, 1, 4>}, {transform_indices = @transform_3, window_bounds = array<i64: 8, 2, 196>}, {transform_indices = @transform_4, window_bounds = array<i64: 8, 2, 196>}]} {
    %c0 = arith.constant 0 : index
    %c0_0 = arith.constant 0 : index
    %c0_1 = arith.constant 0 : index
    %0 = vector.load %arg4[%c0, %c0_0, %c0_1] : memref<8x2x196xf32, #tpu.memory_space<vmem>>, vector<8x2x196xf32>
    %c0_2 = arith.constant 0 : index
    %1 = memref.load %arg1[%c0_2] : memref<4xf32, #tpu.memory_space<smem>>
    %c1 = arith.constant 1 : index
    %2 = memref.load %arg1[%c1] : memref<4xf32, #tpu.memory_space<smem>>
    %c2 = arith.constant 2 : index
    %3 = memref.load %arg1[%c2] : memref<4xf32, #tpu.memory_space<smem>>
    %c3 = arith.constant 3 : index
    %4 = memref.load %arg1[%c3] : memref<4xf32, #tpu.memory_space<smem>>
    %c0_3 = arith.constant 0 : index
    %c0_4 = arith.constant 0 : index
    %c0_5 = arith.constant 0 : index
    %5 = vector.load %arg2[%c0_3, %c0_4, %c0_5] : memref<1x2x196xf32, #tpu.memory_space<vmem>>, vector<1x2x196xf32>
    %6 = vector.extract_strided_slice %5 {offsets = [0, 0, 0], sizes = [1, 1, 196], strides = [1, 1, 1]} : vector<1x2x196xf32> to vector<1x1x196xf32>
    %7 = vector.extract_strided_slice %5 {offsets = [0, 1, 0], sizes = [1, 1, 196], strides = [1, 1, 1]} : vector<1x2x196xf32> to vector<1x1x196xf32>
    %c0_6 = arith.constant 0 : index
    %c0_7 = arith.constant 0 : index
    %c0_8 = arith.constant 0 : index
    %8 = vector.load %arg3[%c0_6, %c0_7, %c0_8] : memref<8x1x4xf32, #tpu.memory_space<vmem>>, vector<8x1x4xf32>
    %9 = vector.extract_strided_slice %8 {offsets = [0, 0, 0], sizes = [8, 1, 1], strides = [1, 1, 1]} : vector<8x1x4xf32> to vector<8x1x1xf32>
    %10 = vector.extract_strided_slice %8 {offsets = [0, 0, 1], sizes = [8, 1, 1], strides = [1, 1, 1]} : vector<8x1x4xf32> to vector<8x1x1xf32>
    %11 = vector.extract_strided_slice %8 {offsets = [0, 0, 2], sizes = [8, 1, 1], strides = [1, 1, 1]} : vector<8x1x4xf32> to vector<8x1x1xf32>
    %12 = vector.extract_strided_slice %8 {offsets = [0, 0, 3], sizes = [8, 1, 1], strides = [1, 1, 1]} : vector<8x1x4xf32> to vector<8x1x1xf32>
    %13 = tpu.iota {dimensions = array<i32: 2>} : vector<1x1x196xi32>
    %cst = arith.constant dense<0.000000e+00> : vector<8x196xf32>
    %14 = vector.multi_reduction <add>, %0, %cst [1] : vector<8x2x196xf32> to vector<8x196xf32>
    %15 = vector.shape_cast %14 : vector<8x196xf32> to vector<8x1x196xf32>
    %cst_9 = arith.constant dense<0xFF800000> : vector<8x1xf32>
    %16 = vector.multi_reduction <maximumf>, %15, %cst_9 [2] : vector<8x1x196xf32> to vector<8x1xf32>
    %17 = vector.shape_cast %16 : vector<8x1xf32> to vector<8x1x1xf32>
    %18 = vector.broadcast %17 : vector<8x1x1xf32> to vector<8x1x196xf32>
    %19 = arith.cmpf oeq, %15, %18 : vector<8x1x196xf32>
    %c196_i32 = arith.constant 196 : i32
    %20 = vector.shape_cast %13 : vector<1x1x196xi32> to vector<1x1x196xi32>
    %21 = vector.broadcast %20 : vector<1x1x196xi32> to vector<8x1x196xi32>
    %22 = vector.broadcast %c196_i32 : i32 to vector<8x1x196xi32>
    %23 = arith.select %19, %21, %22 : vector<8x1x196xi1>, vector<8x1x196xi32>
    %cst_10 = arith.constant dense<2147483647> : vector<8x1xi32>
    %24 = vector.multi_reduction <minsi>, %23, %cst_10 [2] : vector<8x1x196xi32> to vector<8x1xi32>
    %25 = vector.shape_cast %24 : vector<8x1xi32> to vector<8x1x1xi32>
    %26 = vector.broadcast %13 : vector<1x1x196xi32> to vector<8x1x196xi32>
    %27 = vector.broadcast %25 : vector<8x1x1xi32> to vector<8x1x196xi32>
    %28 = arith.cmpi eq, %26, %27 : vector<8x1x196xi32>
    %cst_11 = arith.constant 0.000000e+00 : f32
    %29 = vector.shape_cast %6 : vector<1x1x196xf32> to vector<1x1x196xf32>
    %30 = vector.broadcast %29 : vector<1x1x196xf32> to vector<8x1x196xf32>
    %31 = vector.broadcast %cst_11 : f32 to vector<8x1x196xf32>
    %32 = arith.select %28, %30, %31 : vector<8x1x196xi1>, vector<8x1x196xf32>
    %cst_12 = arith.constant dense<0.000000e+00> : vector<8x1xf32>
    %33 = vector.multi_reduction <add>, %32, %cst_12 [2] : vector<8x1x196xf32> to vector<8x1xf32>
    %34 = vector.shape_cast %33 : vector<8x1xf32> to vector<8x1x1xf32>
    %cst_13 = arith.constant 0.000000e+00 : f32
    %35 = vector.shape_cast %7 : vector<1x1x196xf32> to vector<1x1x196xf32>
    %36 = vector.broadcast %35 : vector<1x1x196xf32> to vector<8x1x196xf32>
    %37 = vector.broadcast %cst_13 : f32 to vector<8x1x196xf32>
    %38 = arith.select %28, %36, %37 : vector<8x1x196xi1>, vector<8x1x196xf32>
    %cst_14 = arith.constant dense<0.000000e+00> : vector<8x1xf32>
    %39 = vector.multi_reduction <add>, %38, %cst_14 [2] : vector<8x1x196xf32> to vector<8x1xf32>
    %40 = vector.shape_cast %39 : vector<8x1xf32> to vector<8x1x1xf32>
    %41 = vector.broadcast %6 : vector<1x1x196xf32> to vector<8x1x196xf32>
    %42 = vector.broadcast %34 : vector<8x1x1xf32> to vector<8x1x196xf32>
    %43 = arith.subf %41, %42 : vector<8x1x196xf32>
    %44 = vector.broadcast %1 : f32 to vector<8x1x196xf32>
    %45 = arith.mulf %43, %44 : vector<8x1x196xf32>
    %46 = vector.broadcast %7 : vector<1x1x196xf32> to vector<8x1x196xf32>
    %47 = vector.broadcast %40 : vector<8x1x1xf32> to vector<8x1x196xf32>
    %48 = arith.subf %46, %47 : vector<8x1x196xf32>
    %49 = vector.broadcast %2 : f32 to vector<8x1x196xf32>
    %50 = arith.mulf %48, %49 : vector<8x1x196xf32>
    %51 = arith.mulf %45, %45 : vector<8x1x196xf32>
    %52 = vector.broadcast %3 : f32 to vector<8x1x196xf32>
    %53 = arith.mulf %51, %52 : vector<8x1x196xf32>
    %54 = math.exp %53 : vector<8x1x196xf32>
    %55 = arith.mulf %50, %50 : vector<8x1x196xf32>
    %56 = vector.broadcast %3 : f32 to vector<8x1x196xf32>
    %57 = arith.mulf %55, %56 : vector<8x1x196xf32>
    %58 = math.exp %57 : vector<8x1x196xf32>
    %59 = arith.addf %54, %58 : vector<8x1x196xf32>
    %60 = vector.broadcast %4 : f32 to vector<8x1x196xf32>
    %61 = arith.mulf %59, %60 : vector<8x1x196xf32>
    %c0_i32 = arith.constant 0 : i32
    %62 = arith.sitofp %c0_i32 : i32 to f32
    %63 = vector.shape_cast %28 : vector<8x1x196xi1> to vector<8x1x196xi1>
    %64 = vector.broadcast %63 : vector<8x1x196xi1> to vector<8x2x196xi1>
    %65 = vector.broadcast %62 : f32 to vector<8x2x196xf32>
    %66 = arith.select %64, %0, %65 : vector<8x2x196xi1>, vector<8x2x196xf32>
    %cst_15 = arith.constant dense<0.000000e+00> : vector<8x2xf32>
    %67 = vector.multi_reduction <add>, %66, %cst_15 [2] : vector<8x2x196xf32> to vector<8x2xf32>
    %68 = vector.shape_cast %67 : vector<8x2xf32> to vector<8x2x1xf32>
    %cst_16 = arith.constant dense<0.000000e+00> : vector<8x2xf32>
    %69 = vector.multi_reduction <add>, %0, %cst_16 [2] : vector<8x2x196xf32> to vector<8x2xf32>
    %70 = vector.shape_cast %69 : vector<8x2xf32> to vector<8x2x1xf32>
    %cst_17 = arith.constant 0.00510204071 : f32
    %71 = vector.broadcast %cst_17 : f32 to vector<8x2x1xf32>
    %72 = arith.mulf %70, %71 : vector<8x2x1xf32>
    %73 = vector.broadcast %12 : vector<8x1x1xf32> to vector<8x2x1xf32>
    %74 = arith.mulf %68, %73 : vector<8x2x1xf32>
    %75 = vector.broadcast %11 : vector<8x1x1xf32> to vector<8x2x1xf32>
    %76 = arith.mulf %72, %75 : vector<8x2x1xf32>
    %77 = vector.broadcast %74 : vector<8x2x1xf32> to vector<8x2x196xf32>
    %78 = arith.mulf %0, %77 : vector<8x2x196xf32>
    %cst_18 = arith.constant dense<0.000000e+00> : vector<8x196xf32>
    %79 = vector.multi_reduction <add>, %78, %cst_18 [1] : vector<8x2x196xf32> to vector<8x196xf32>
    %80 = vector.shape_cast %79 : vector<8x196xf32> to vector<8x1x196xf32>
    %81 = vector.broadcast %76 : vector<8x2x1xf32> to vector<8x2x196xf32>
    %82 = arith.mulf %0, %81 : vector<8x2x196xf32>
    %cst_19 = arith.constant dense<0.000000e+00> : vector<8x196xf32>
    %83 = vector.multi_reduction <add>, %82, %cst_19 [1] : vector<8x2x196xf32> to vector<8x196xf32>
    %84 = vector.shape_cast %83 : vector<8x196xf32> to vector<8x1x196xf32>
    %85 = arith.mulf %80, %61 : vector<8x1x196xf32>
    %86 = arith.addf %85, %84 : vector<8x1x196xf32>
    %cst_20 = arith.constant dense<0.000000e+00> : vector<8x1xf32>
    %87 = vector.multi_reduction <add>, %86, %cst_20 [2] : vector<8x1x196xf32> to vector<8x1xf32>
    %88 = vector.shape_cast %87 : vector<8x1xf32> to vector<8x1x1xf32>
    %cst_21 = arith.constant 0.00510204071 : f32
    %89 = vector.broadcast %cst_21 : f32 to vector<8x1x1xf32>
    %90 = arith.mulf %88, %89 : vector<8x1x1xf32>
    %91 = arith.mulf %86, %86 : vector<8x1x196xf32>
    %cst_22 = arith.constant dense<0.000000e+00> : vector<8x1xf32>
    %92 = vector.multi_reduction <add>, %91, %cst_22 [2] : vector<8x1x196xf32> to vector<8x1xf32>
    %93 = vector.shape_cast %92 : vector<8x1xf32> to vector<8x1x1xf32>
    %cst_23 = arith.constant 1.960000e+02 : f32
    %94 = vector.broadcast %cst_23 : f32 to vector<8x1x1xf32>
    %95 = arith.mulf %94, %90 : vector<8x1x1xf32>
    %96 = arith.mulf %95, %90 : vector<8x1x1xf32>
    %97 = arith.subf %93, %96 : vector<8x1x1xf32>
    %cst_24 = arith.constant 0.000000e+00 : f32
    %98 = vector.broadcast %cst_24 : f32 to vector<8x1x1xf32>
    %99 = arith.maximumf %97, %98 : vector<8x1x1xf32>
    %cst_25 = arith.constant 0.00512820529 : f32
    %100 = vector.broadcast %cst_25 : f32 to vector<8x1x1xf32>
    %101 = arith.mulf %99, %100 : vector<8x1x1xf32>
    %102 = math.sqrt %101 : vector<8x1x1xf32>
    %cst_26 = arith.constant 9.99999974E-6 : f32
    %103 = vector.broadcast %cst_26 : f32 to vector<8x1x1xf32>
    %104 = arith.addf %102, %103 : vector<8x1x1xf32>
    %105 = vector.broadcast %90 : vector<8x1x1xf32> to vector<8x1x196xf32>
    %106 = arith.subf %86, %105 : vector<8x1x196xf32>
    %107 = arith.divf %9, %104 : vector<8x1x1xf32>
    %108 = vector.broadcast %107 : vector<8x1x1xf32> to vector<8x1x196xf32>
    %109 = arith.mulf %106, %108 : vector<8x1x196xf32>
    %110 = vector.broadcast %10 : vector<8x1x1xf32> to vector<8x1x196xf32>
    %111 = arith.addf %109, %110 : vector<8x1x196xf32>
    %112 = arith.negf %111 : vector<8x1x196xf32>
    %113 = math.exp %112 : vector<8x1x196xf32>
    %cst_27 = arith.constant 1.000000e+00 : f32
    %114 = vector.broadcast %cst_27 : f32 to vector<8x1x196xf32>
    %115 = arith.addf %114, %113 : vector<8x1x196xf32>
    %116 = arith.divf %114, %115 : vector<8x1x196xf32>
    %117 = vector.broadcast %116 : vector<8x1x196xf32> to vector<8x2x196xf32>
    %118 = arith.mulf %0, %117 : vector<8x2x196xf32>
    %c0_28 = arith.constant 0 : index
    %c0_29 = arith.constant 0 : index
    %c0_30 = arith.constant 0 : index
    %119 = vector.load %arg5[%c0_28, %c0_29, %c0_30] : memref<8x2x196xf32, #tpu.memory_space<vmem>>, vector<8x2x196xf32>
    tpu.vector_store %arg5[%c0_28, %c0_29, %c0_30], %118 {strides = array<i32>} : memref<8x2x196xf32, #tpu.memory_space<vmem>>, vector<8x2x196xf32>,
    return
  }
  func.func @transform_0(%arg0: i32) -> i32 {
    %c0_i32 = arith.constant 0 : i32
    %c0_i32_0 = arith.constant 0 : i32
    return %c0_i32 : i32
  }
  func.func @transform_1(%arg0: i32) -> (i32, i32, i32) {
    %c0_i32 = arith.constant 0 : i32
    %c0_i32_0 = arith.constant 0 : i32
    %c0_i32_1 = arith.constant 0 : i32
    %c0_i32_2 = arith.constant 0 : i32
    return %c0_i32, %c0_i32_0, %c0_i32_1 : i32, i32, i32
  }
  func.func @transform_2(%arg0: i32) -> (i32, i32, i32) {
    %c0_i32 = arith.constant 0 : i32
    %c0_i32_0 = arith.constant 0 : i32
    %c0_i32_1 = arith.constant 0 : i32
    %c0_i32_2 = arith.constant 0 : i32
    return %c0_i32, %c0_i32_0, %c0_i32_1 : i32, i32, i32
  }
  func.func @transform_3(%arg0: i32) -> (i32, i32, i32) {
    %c0_i32 = arith.constant 0 : i32
    %c0_i32_0 = arith.constant 0 : i32
    %c0_i32_1 = arith.constant 0 : i32
    return %arg0, %c0_i32, %c0_i32_0 : i32, i32, i32
  }
  func.func @transform_4(%arg0: i32) -> (i32, i32, i32) {
    %c0_i32 = arith.constant 0 : i32
    %c0_i32_0 = arith.constant 0 : i32
    %c0_i32_1 = arith.constant 0 : i32
    return %arg0, %c0_i32, %c0_i32_0 : i32, i32, i32
  }
}

</mosaic_0001>

<bundles_post_ra>
// kernel: tpu_custom_call.1
= control target key start
LH: loop header
LB: loop body
LE: loop exit
PB: predicated region body
PF: predicated region fallthrough
CT: control target
= control target key end

     0   :  { %s5087_s0 = inlined_call_operand.hbm [shape: f32[4], index: 0, kind: input, shape index: {}]   ;;  %s5088_s1 = inlined_call_operand.hbm [shape: f32[1,2,196], index: 1, kind: input, shape index: {}]   ;;  %s5089_s2 = inlined_call_operand.hbm [shape: f32[8,1,4], index: 2, kind: input, shape index: {}]   ;;  %s5090_s3 = inlined_call_operand.hbm [shape: f32[16,2,196], index: 3, kind: input, shape index: {}]   ;;  %s5091_s4 = inlined_call_operand.hbm [shape: f32[16,2,196], index: 4, kind: output, shape index: {}]  }
   0x1   :  { %5107 = sst [smem:[#allocation20_spill]] %s5087_s0 }
   0x2   :  { %9 = vsyncpa [#allocation5], 0 }
   0x3   :  { %10 = vsyncpa [#allocation3], 0 }
   0x4   :  { %11 = vsyncpa [#allocation8], 0 }
   0x5   :  { %12 = vsyncpa [#allocation4], 0 }
   0x6   :  { %14 = vsyncpa [#allocation4 + $0x1], 0  ;;  %s3382_s15 = smov 0   ;;  %s3384_s16 = smov 0  }
   0x7   :  { %s3386_s17 = smov 0   ;;  %s3388_s18 = smov 0  }
   0x8 LB: > { %s3403_s19 = sadd.s32 4294967295, %s3338_s18   ;;  %s2839_s20 = sadd.s32 4294967294, %s3338_s18   ;;  %s3338_s18 = sphi %s3388_s18, %s5165_s18   ;;  %s3334_s17 = sphi %s3386_s17, %s5164_s17   ;;  %s3330_s16 = sphi %s3384_s16, %s5163_s16   ;;  %s3326_s15 = sphi %s3382_s15, %s5162_s15  }
   0x9   : > { %s3407_s21 = sadd.s32 1, %s3338_s18   ;;  %s90_s22 = sadd.s32 1, %s3334_s17 }
   0xa   : > { %s87_s23 = ssub.s32 %s3338_s18, %s3407_s21  ;;  %p97_p0 = scmp.ne.s32.totalorder %s3334_s17, %s3330_s16 }
   0xb   : > { %p88_p1 = scmp.eq.s32.totalorder %s87_s23, 0  ;;  %p98_p2 = scmp.eq.s32.totalorder %s3338_s18, 0 }
   0xc   : > { %p103_p3 = scmp.ne.s32.totalorder %s3330_s16, %s3326_s15  ;;  %p5092_p4 = scmp.eq.s32.totalorder %s3403_s19, 0 }
   0xd   : > { %s3419_s24 = scalar_select %p88_p1, %s3334_s17, %s90_s22  }
   0xe   : > { %p3421_p5 = por %p98_p2, %p97_p0  ;;  %p3427_p6 = por %p5092_p4, %p103_p3 }
   0xf   : > { %p127_p7 = scmp.eq.s32.totalorder %s3403_s19, 1  ;;  %p133_p8 = scmp.eq.s32.totalorder %s2839_s20, 1 }
  0x10   : > { %s5109_s26 = scalar_select %p3427_p6, 1, 0 }
  0x11   : > { %p2840_p9 = scmp.ge.s32.totalorder %s3338_s18, 1  ;;  %p140_p10 = scmp.lt.s32.totalorder %s3338_s18, 3 }
  0x12   : > { %p3434_p11 = por %p127_p7, %p97_p0  ;;  %p3438_p12 = por %p133_p8, %p103_p3 }
  0x13   : > { %p3442_p13 = pnand %p2840_p9, %p140_p10  ;;  %s3340_s30 = smov [#allocation6]  }
  0x14   : > { %s5110_s27 = scalar_select %p3434_p11, 1, 0 }
  0x15   : > { %s5111_s28 = scalar_select %p3438_p12, 1, 0 }
  0x16   : > { %s5112_s29 = scalar_select %p3442_p13, 1, 0 }
  0x17   : > { %p2908_p2 = pneg %p3442_p13  ;;  %s162_s5 = sshll.u32 %s3340_s30, 4  ;;  %s163_s5 = int_to_ptr.vmem [resolvable:$true] %s162_s5 }
  0x18   : > { %p2929_p4 = scmp.lt.s32.totalorder %s3338_s18, 2  ;;  %p5113_p0 = scmp.eq.s32.totalorder %s3403_s19, 0 }
  0x19   : > { %s3341_s8 = smov [#allocation7]   ;;  %s3161_s12 = scalar_lea.hbm %s5088_s1, 64 }
  0x1a   : > { %p3452_p7 = pnand %p2908_p2, %p5113_p0  ;;  %p3458_p3 = pnand %p2929_p4, %p3421_p5 }
  0x1b   : > { %s172_s9 = sshll.u32 %s3341_s8, 4  ;;  %p3162_p8 = scmp.ne.s32.totalorder %s5088_s1, %s3161_s12  ;;  %s3486_s9 = int_to_ptr.vmem [resolvable:$true] %s172_s9 }
  0x1c   : > { %s5115_s7 = scalar_select %p3458_p3, 1, 0 }
  0x1d   : > { %p3470_p9 = pneg %p3452_p7  ;;  %p3168_p10 = scmp.lt.u32.totalorder %s3161_s12, %s5088_s1 }
  0x1f   : > { %p3164_p4 = pnand %p3470_p9, %p3162_p8 }
  0x21   : > { %p3165_p5 = pneg %p3164_p4 }
  0x23   : > { %p3170_p2 = pnand %p3168_p10, %p3165_p5 }
  0x25   : > { %3173 = shalt.err (!%p3170_p2)
}
  0x26   : > { %s3174_s25 = scalar_lea.vmem %s163_s5, 64  ;;  %p3182_p11 = scmp.lt.s32.totalorder %s163_s5, %s163_s5 }
  0x27   : > { %p3175_p0 = scmp.ne.s32.totalorder %s163_s5, %s3174_s25  ;;  %p3183_p6 = scmp.lt.s32.totalorder %s3174_s25, %s3174_s25 }
  0x29   : > { %p3177_p1 = pnand %p3175_p0, %p3470_p9  ;;  %p3184_p13 = por %p3183_p6, %p3182_p11 }
  0x2b   : > { %p3178_p12 = pneg %p3177_p1 }
  0x2d   : > { %p3185_p3 = pnand %p3184_p13, %p3178_p12 }
  0x2f   : > { %3188 = shalt.err (!%p3185_p3)
}
  0x30   : > { %2914 = dma.hbm_to_vmem [thread:$0]  (!%p3452_p7), %s5088_s1, 64, %s163_s5, [#allocation3]  }
  0x31   : > { %s5117_s0 = sld [smem:[#allocation20_spill]] }
  0x37   : > { %s3189_s12 = scalar_lea.hbm %s5117_s0, 16 }
  0x38   : > { %p3190_p1 = scmp.ne.s32.totalorder %s5117_s0, %s3189_s12  ;;  %p3196_p12 = scmp.lt.u32.totalorder %s3189_s12, %s5117_s0 }
  0x3a   : > { %p3192_p6 = pnand %p3190_p1, %p3470_p9 }
  0x3c   : > { %p3193_p11 = pneg %p3192_p6 }
  0x3e   : > { %p3198_p13 = pnand %p3196_p12, %p3193_p11 }
  0x40   : > { %3201 = shalt.err (!%p3198_p13)
}
  0x41   : > { %s3342_s5 = smov [#allocation2]   ;;  %s3202_s11 = scalar_lea.hbm %s5089_s2, 128 }
  0x42   : > { %2911 = dma.hbm_to_smem (!%p3452_p7), %s5117_s0, 16, %s3342_s5, [#allocation5]  }
  0x43   : > { %p3203_p3 = scmp.ne.s32.totalorder %s5089_s2, %s3202_s11  ;;  %p3209_p5 = scmp.lt.u32.totalorder %s3202_s11, %s5089_s2 }
  0x45   : > { %p3205_p8 = pnand %p3203_p3, %p3470_p9 }
  0x47   : > { %p3206_p4 = pneg %p3205_p8 }
  0x49   : > { %p3211_p10 = pnand %p3209_p5, %p3206_p4 }
  0x4b   : > { %3214 = shalt.err (!%p3211_p10)
}
  0x4c   : > { %s3215_s23 = scalar_lea.vmem %s3486_s9, 128  ;;  %p3223_p6 = scmp.lt.s32.totalorder %s3486_s9, %s3486_s9 }
  0x4d   : > { %p3216_p2 = scmp.ne.s32.totalorder %s3486_s9, %s3215_s23  ;;  %p3224_p11 = scmp.lt.s32.totalorder %s3215_s23, %s3215_s23 }
  0x4f   : > { %p3218_p0 = pnand %p3216_p2, %p3470_p9  ;;  %p3225_p12 = por %p3224_p11, %p3223_p6 }
  0x51   : > { %p3219_p1 = pneg %p3218_p0 }
  0x53   : > { %p3226_p13 = pnand %p3225_p12, %p3219_p1 }
  0x55   : > { %3229 = shalt.err (!%p3226_p13)
}
  0x56   : > { %s3343_s5 = smov 16   ;;  %s3344_s25 = smov 1  }
  0x57   : > { %2917 = dma.hbm_to_vmem [thread:$0]  (!%p3452_p7), %s5089_s2, 128, %s3486_s9, [#allocation8], %s3343_s5, %s3343_s5, %s3344_s25  }
  0x58   : > { %s186_s8 = sand.u32 1, %s3338_s18   ;;  %s188_s10 = sand.u32 1, %s3334_s17  }
  0x59   : > { %s2845_s11 = sshll.u32 %s188_s10, 5  ;;  %s2889_s13 = sshll.u32 %s3338_s18, 9 }
  0x5a   : > { %s3533_s22 = scalar_lea.hbm %s5090_s3, %s2889_s13  ;;  %s190_s23 = scalar_lea.vmem [#allocation9], %s2845_s11 }
  0x5b   : > { %s198_s0 = sshll.u32 %s190_s23, 4  ;;  %s3537_s6 = scalar_lea.sflag [#allocation3], %s186_s8  ;;  %s3535_s0 = int_to_ptr.vmem [resolvable:$true] %s198_s0 }
  0x5c   : > { %s3230_s9 = scalar_lea.hbm %s3533_s22, 512  ;;  %p5118_p9 = scmp.ne.s32.totalorder %s5115_s7, 0 }
  0x5d   : > { %p3231_p7 = scmp.ne.s32.totalorder %s3533_s22, %s3230_s9  ;;  %s3235_s30 = scalar_lea.hbm %s5090_s3, 1024 }
  0x5e   : > { %p3232_p3 = pneg %p5118_p9  ;;  %p3236_p5 = scmp.lt.u32.totalorder %s3533_s22, %s5090_s3 }
  0x5f   : > { %p3237_p10 = scmp.lt.u32.totalorder %s3235_s30, %s3230_s9  ;;  %p3239_p0 = scmp.lt.u32.totalorder %s3230_s9, %s3533_s22 }
  0x60   : > { %p3233_p8 = pnand %p3232_p3, %p3231_p7 }
  0x61   : > { %p3238_p2 = por %p3237_p10, %p3236_p5 }
  0x62   : > { %p3234_p4 = pneg %p3233_p8 }
  0x63   : > { %p3240_p1 = por %p3239_p0, %p3238_p2 }
  0x65   : > { %p3241_p6 = pnand %p3240_p1, %p3234_p4 }
  0x67   : > { %3244 = shalt.err (!%p3241_p6)
}
  0x68   : > { %s3245_s8 = scalar_lea.vmem %s3535_s0, 512  ;;  %s3345_s11 = smov [#allocation9]  }
  0x69   : > { %p3246_p11 = scmp.ne.s32.totalorder %s3535_s0, %s3245_s8  ;;  %s3250_s13 = sshll.u32 %s3345_s11, 4  ;;  %s3251_s13 = int_to_ptr.vmem [resolvable:$false] %s3250_s13 }
  0x6a   : > { %s3252_s14 = scalar_lea.vmem %s3251_s13, 1024  ;;  %p3253_p7 = scmp.lt.s32.totalorder %s3535_s0, %s3251_s13 }
  0x6b   : > { %p3248_p12 = pnand %p3246_p11, %p3232_p3  ;;  %p3254_p8 = scmp.lt.s32.totalorder %s3252_s14, %s3245_s8 }
  0x6d   : > { %p3249_p13 = pneg %p3248_p12  ;;  %p3255_p5 = por %p3254_p8, %p3253_p7 }
  0x6f   : > { %p3256_p10 = pnand %p3255_p5, %p3249_p13 }
  0x71   : > { %3259 = shalt.err (!%p3256_p10)
}
  0x72   : > { %s3346_s12 = smov 64   ;;  %s3347_s23 = smov 4  }
  0x73   : > { %2921 = dma.hbm_to_vmem [thread:$0]  (!%p5118_p9), %s3533_s22, 512, %s3535_s0, %s3537_s6, %s3346_s12, %s3346_s12, %s3347_s23  }
  0x74   : > { %p5119_p3 = scmp.ne.s32.totalorder %s5112_s29, 0 }
  0x76   : > { %210 = sbr.rel (%p5119_p3) target bundleno = 1374 (0x55e), region = 36 }
  0x7d   : > { %p5120_p4 = scmp.eq.s32.totalorder %s3403_s19, 0 }
  0x7f   : > { %3305 = dma.done.wait (%p5120_p4), [#allocation5], 16   ;;  %p5121_p2 = pmov %p5120_p4 }
  0x81   : > { %3307 = vsyncadd (%p5121_p2), [#allocation5], 4294967280  ;;  %p5122_p0 = pmov %p5121_p2 }
  0x83   : > { %3309 = dma.done.wait (%p5122_p0), [#allocation3], 64   ;;  %p5123_p1 = pmov %p5122_p0 }
  0x84   : > { %p5124_p6 = pmov %p5122_p0 }
  0x85   : > { %3311 = vsyncadd (%p5123_p1), [#allocation3], 4294967232 }
  0x86   : > { %3313 = dma.done.wait (%p5124_p6), [#allocation8], 128   ;;  %p5125_p9 = pmov %p5122_p0 }
  0x87   : > { %s224_s0 = sand.u32 1, %s3403_s19   ;;  %s226_s29 = sand.u32 1, %s3330_s16  }
  0x88   : > { %3315 = vsyncadd (%p5125_p9), [#allocation8], 4294967168  ;;  %s3583_s7 = sshll.u32 %s226_s29, 5  ;;  %s225_s22 = scalar_lea.sflag [#allocation3], %s224_s0 }
  0x89   : > { %s3586_s6 = scalar_lea.vmem [#allocation9], %s3583_s7  ;;  %p5126_p11 = scmp.ne.s32.totalorder %s5109_s26, 0 }
  0x8b   : > { %3317 = dma.done.wait (%p5126_p11), %s225_s22, 512  }
  0x8c   : > { %3319 = vsyncadd (%p5126_p11), %s225_s22, 4294966784 }
  0x8d   : > { %233 = sfence }
  0x8e   : > { %v5097_v0 = vlaneseq  ;;  %v3348_v1 = vmov 1983009808   ;;  %v3596_v4 = vld.sshfl [vmem:[%s3586_s6] sm:$0x33 pattern:$0x76325410] }
  0x8f   : > { %v289_v2 = vunpack.c.l.s4 %v3348_v1  ;;  %v3599_v6 = vld.sshfl [vmem:[%s3586_s6 + $0x8] sm:$0x33 pattern:$0x76325410]  ;;  %vm368_vm0 = vcmask 1041408   ;;  %vm376_vm1 = vcmask 549888   ;;  %v3624_v14 = vcombine.high %v3596_v4, %v3596_v4 }
  0x90   : > { %v3593_v3 = vshrl.u32 %v5097_v0, 7  ;;  %v3602_v7 = vld.sshfl [vmem:[%s3586_s6 + $0x4] sm:$0x33 pattern:$0x76325410]  ;;  %v3628_v15 = vsel %vm368_vm0, %v3596_v4, 0.0  ;;  %v3632_v16 = vcombine.high %v3599_v6, %v3599_v6 }
  0x91   : > { %v290_v5 = vunpack.c.0.s8 %v289_v2  ;;  %v3605_v8 = vld.sshfl [vmem:[%s3586_s6 + $0xc] sm:$0x33 pattern:$0x76325410]  ;;  %v3636_v17 = vsel %vm368_vm0, %v3599_v6, 0.0  ;;  %v370_v18 = vrot.slane %v3628_v15, 4  ;;  %v3642_v20 = vcombine.high %v3602_v7, %v3602_v7 }
  0x92   : > { %v3608_v9 = vld.sshfl [vmem:[%s3586_s6 + $0x10] sm:$0x33 pattern:$0x76325410]  ;;  %v399_v19 = vrot.slane %v3636_v17, 4  ;;  %v3646_v21 = vsel %vm368_vm0, %v3602_v7, 0.0  ;;  %v3659_v25 = vcombine.high %v3605_v8, %v3605_v8 }
  0x93   : > { %v3611_v10 = vsub.s32 %v290_v5, %v3593_v3  ;;  %v3614_v11 = vld.sshfl [vmem:[%s3586_s6 + $0x14] sm:$0x33 pattern:$0x76325410]  ;;  %v3650_v22 = vsel %vm376_vm1, %v3624_v14, 0.0  ;;  %v3654_v23 = vsel %vm376_vm1, %v3632_v16, 0.0  ;;  %v371_v26 = vadd.f32 %v370_v18, %v3628_v15 }
  0x94   : > { %v3617_v12 = vld.sshfl [vmem:[%s3586_s6 + $0x18] sm:$0x33 pattern:$0x76325410]  ;;  %v385_v24 = vrot.slane %v3646_v21, 4  ;;  %v378_v27 = vrot.slane %v3650_v22, 4  ;;  %v400_v28 = vadd.f32 %v399_v19, %v3636_v17  ;;  %v3698_v19 = vcombine.high %v3608_v9, %v3608_v9 }
  0x95   : > { %5127 = vst [vmem:[#allocation16_spill] sm:$0xff] %v3611_v10  ;;  %v3620_v13 = vld.sshfl [vmem:[%s3586_s6 + $0x1c] sm:$0x33 pattern:$0x76325410]  ;;  %v406_v29 = vrot.slane %v3654_v23, 4 }
  0x96   : > { %5128 = vst [vmem:[#allocation17_spill] sm:$0xff] %v3620_v13  ;;  %vm482_vm2 = vcmask 556032   ;;  %v386_v30 = vadd.f32 %v385_v24, %v3646_v21  ;;  %v3668_v31 = vsel %vm376_vm1, %v3642_v20, 0.0  ;;  %v3672_v32 = vsel %vm368_vm0, %v3605_v8, 0.0  ;;  %s4361_s26 = sld [smem:[#allocation2 + $0x1]]  ;;  %s4375_s9 = sld [smem:[#allocation2 + $0x2]] }
  0x97   : > { %v3676_v33 = vsel %vm376_vm1, %v3659_v25, 0.0  ;;  %v372_v34 = vrot.slane %v371_v26, 2  ;;  %v379_v35 = vadd.f32 %v378_v27, %v3650_v22  ;;  %v401_v36 = vrot.slane %v400_v28, 2  ;;  %s4392_s5 = sld [smem:[#allocation2]]  ;;  %s4500_s25 = sld [smem:[#allocation2 + $0x3]] }
  0x98   : > { %v407_v37 = vadd.f32 %v406_v29, %v3654_v23  ;;  %v387_v38 = vrot.slane %v386_v30, 2  ;;  %v392_v39 = vrot.slane %v3668_v31, 4  ;;  %v413_v40 = vrot.slane %v3672_v32, 4  ;;  %s4950_s30 = scalar_lea.vmem [#allocation10], %s3583_s7  ;;  %s2891_s20 = sshll.u32 %s3403_s19, 9 }
  0x99   : > { %v420_v41 = vrot.slane %v3676_v33, 4  ;;  %v373_v42 = vadd.f32 %v372_v34, %v371_v26  ;;  %v380_v43 = vrot.slane %v379_v35, 2  ;;  %v402_v44 = vadd.f32 %v401_v36, %v400_v28  ;;  %s2735_s10 = sshll.u32 %s4950_s30, 4  ;;  %s5035_s13 = scalar_lea.hbm %s5091_s4, %s2891_s20  ;;  %s5037_s10 = int_to_ptr.vmem [resolvable:$true] %s2735_s10 }
  0x9a   : > { %v408_v45 = vrot.slane %v407_v37, 2  ;;  %v388_v46 = vadd.f32 %v387_v38, %v386_v30  ;;  %v393_v47 = vadd.f32 %v392_v39, %v3668_v31  ;;  %v414_v48 = vadd.f32 %v413_v40, %v3672_v32  ;;  %s5045_s19 = scalar_lea.sflag [#allocation4], %s226_s29  ;;  %s3260_s14 = scalar_lea.vmem %s5037_s10, 512 }
  0x9b   : > { %v421_v49 = vadd.f32 %v420_v41, %v3676_v33  ;;  %v374_v50 = vrot.slane %v373_v42, 1  ;;  %v381_v51 = vadd.f32 %v380_v43, %v379_v35  ;;  %v403_v52 = vrot.slane %v402_v44, 1  ;;  %p3261_p12 = scmp.ne.s32.totalorder %s5037_s10, %s3260_s14  ;;  %p5159_p13 = scmp.ne.s32.totalorder %s5110_s27, 0 }
  0x9c   : > { %v409_v53 = vadd.f32 %v408_v45, %v407_v37  ;;  %v389_v54 = vrot.slane %v388_v46, 1  ;;  %v394_v55 = vrot.slane %v393_v47, 2  ;;  %v415_v56 = vrot.slane %v414_v48, 2  ;;  %s3354_s12 = smov [#allocation10]  }
  0x9d   : > { %v422_v57 = vrot.slane %v421_v49, 2  ;;  %v3686_v58 = vadd.f32 %v374_v50, %v373_v42  ;;  %v382_v59 = vrot.slane %v381_v51, 1  ;;  %v3688_v60 = vadd.f32 %v403_v52, %v402_v44  ;;  %p3262_p7 = pnand %p3261_p12, %p5159_p13  ;;  %s3264_s23 = sshll.u32 %s3354_s12, 4  ;;  %s3265_s23 = int_to_ptr.vmem [resolvable:$false] %s3264_s23 }
  0x9e   : > { %v410_v61 = vrot.slane %v409_v53, 1  ;;  %v3690_v62 = vadd.f32 %v389_v54, %v388_v46  ;;  %v395_v63 = vadd.f32 %v394_v55, %v393_v47  ;;  %v416_v1 = vadd.f32 %v415_v56, %v414_v48  ;;  %s3266_s0 = scalar_lea.vmem %s3265_s23, 1024  ;;  %p3267_p5 = scmp.lt.s32.totalorder %s5037_s10, %s3265_s23 }
  0x9f   : > { %v423_v2 = vadd.f32 %v422_v57, %v421_v49  ;;  %v3692_v5 = vadd.f32 %v382_v59, %v381_v51  ;;  %v3702_v24 = vsel %vm368_vm0, %v3608_v9, 0.0  ;;  %v3711_v35 = vsel %vm376_vm1, %v3698_v19, 0.0  ;;  %p3263_p8 = pneg %p3262_p7  ;;  %p3268_p10 = scmp.lt.s32.totalorder %s3266_s0, %s3260_s14 }
  0xa0   : > { %v3694_v18 = vadd.f32 %v410_v61, %v409_v53  ;;  %v396_v26 = vrot.slane %v395_v63, 1  ;;  %v417_v27 = vrot.slane %v416_v1, 1  ;;  %v427_v29 = vrot.slane %v3702_v24, 4 }
  0xa1   : > { %v424_v28 = vrot.slane %v423_v2, 1  ;;  %v483_v30 = vsel %vm482_vm2, %v3692_v5, -inf  ;;  %v3715_v36 = vcombine.high %v3614_v11, %v3614_v11  ;;  %v434_v43 = vrot.slane %v3711_v35, 4  ;;  %p3269_p3 = por %p3268_p10, %p3267_p5 }
  0xa2   : > { %v491_v34 = vsel %vm482_vm2, %v3694_v18, -inf  ;;  %v484_v37 = vmax.f32 %v3686_v58, %v483_v30  ;;  %v3719_v39 = vadd.f32 %v396_v26, %v395_v63  ;;  %v3721_v40 = vadd.f32 %v417_v27, %v416_v1 }
  0xa3   : > { %v492_v38 = vmax.f32 %v3688_v60, %v491_v34  ;;  %v3723_v41 = vadd.f32 %v424_v28, %v423_v2  ;;  %v428_v42 = vadd.f32 %v427_v29, %v3702_v24  ;;  %v3729_v44 = vsel %vm368_vm0, %v3614_v11, 0.0  ;;  %p3270_p4 = pnand %p3269_p3, %p3263_p8 }
  0xa4   : > { %485 = vmax.xlane.f32.xlu0 %v484_v37  ;;  %v487_v45 = vsel %vm482_vm2, %v3719_v39, -inf  ;;  %v441_v46 = vrot.slane %v3729_v44, 4  ;;  %v3736_v47 = vsel %vm376_vm1, %v3715_v36, 0.0  ;;  %v3740_v48 = vcombine.high %v3617_v12, %v3617_v12 }
  0xa5   : > { %493 = vmax.xlane.f32.xlu1 %v492_v38  ;;  %v488_v49 = vmax.f32 %v3690_v62, %v487_v45  ;;  %v495_v50 = vsel %vm482_vm2, %v3723_v41, -inf  ;;  %v429_v51 = vrot.slane %v428_v42, 2  ;;  %v435_v52 = vadd.f32 %v434_v43, %v3711_v35 }
  0xa6   : > { %5129 = vst [vmem:[#allocation18_spill] sm:$0xff] %v3740_v48  ;;  %v496_v53 = vmax.f32 %v3721_v40, %v495_v50  ;;  %v442_v54 = vadd.f32 %v441_v46, %v3729_v44  ;;  %v448_v55 = vrot.slane %v3736_v47, 4  ;;  %v3751_v56 = vsel %vm368_vm0, %v3617_v12, 0.0 }
  0xa7   : > { %v430_v57 = vadd.f32 %v429_v51, %v428_v42  ;;  %v436_v59 = vrot.slane %v435_v52, 2  ;;  %v455_v61 = vrot.slane %v3751_v56, 4  ;;  %v3756_v63 = vsel %vm376_vm1, %v3740_v48, 0.0 }
  0xa8   : > { %489 = vmax.xlane.f32.xlu0 %v488_v49  ;;  %v443_v1 = vrot.slane %v442_v54, 2  ;;  %v449_v2 = vadd.f32 %v448_v55, %v3736_v47  ;;  %v462_v26 = vrot.slane %v3756_v63, 4  ;;  %v3762_v27 = vcombine.high %v3620_v13, %v3620_v13 }
  0xa9   : > { %497 = vmax.xlane.f32.xlu1 %v496_v53  ;;  %v431_v28 = vrot.slane %v430_v57, 1  ;;  %v437_v29 = vadd.f32 %v436_v59, %v435_v52  ;;  %v456_v30 = vadd.f32 %v455_v61, %v3751_v56  ;;  %v468_v34 = vsel %vm368_vm0, %v3620_v13, 0.0 }
  0xaa   : > { %5130 = vst [vmem:[#allocation19_spill] sm:$0xff] %v3762_v27  ;;  %v444_v37 = vadd.f32 %v443_v1, %v442_v54  ;;  %v450_v38 = vrot.slane %v449_v2, 2  ;;  %v463_v42 = vadd.f32 %v462_v26, %v3756_v63  ;;  %v469_v43 = vrot.slane %v468_v34, 4 }
  0xab   : > { %v3768_v45 = vadd.f32 %v431_v28, %v430_v57  ;;  %v438_v46 = vrot.slane %v437_v29, 1  ;;  %v457_v49 = vrot.slane %v456_v30, 2  ;;  %v475_v50 = vsel %vm376_vm1, %v3762_v27, 0.0 }
  0xac   : > { %v445_v51 = vrot.slane %v444_v37, 1  ;;  %v451_v53 = vadd.f32 %v450_v38, %v449_v2  ;;  %v464_v52 = vrot.slane %v463_v42, 2  ;;  %v470_v55 = vadd.f32 %v469_v43, %v468_v34 }
  0xad   : > { %v3772_v59 = vadd.f32 %v438_v46, %v437_v29  ;;  %v458_v61 = vadd.f32 %v457_v49, %v456_v30  ;;  %v476_v0 = vrot.slane %v475_v50, 4 }
  0xae   : > { %v452_v54 = vrot.slane %v451_v53, 1  ;;  %v465_v1 = vadd.f32 %v464_v52, %v463_v42  ;;  %v471_v10 = vrot.slane %v470_v55, 2  ;;  %v3776_v26 = vadd.f32 %v445_v51, %v444_v37 }
  0xaf   : > { %v499_v57 = vsel %vm482_vm2, %v3772_v59, -inf  ;;  %v459_v28 = vrot.slane %v458_v61, 1  ;;  %v477_v13 = vadd.f32 %v476_v0, %v475_v50  ;;  %v1222_v52 = vadd.f32 %v3650_v22, %v3628_v15 }
  0xb0   : > { %v500_v27 = vmax.f32 %v3768_v45, %v499_v57  ;;  %v3779_v48 = vadd.f32 %v452_v54, %v451_v53  ;;  %v466_v2 = vrot.slane %v465_v1, 1  ;;  %v472_v38 = vadd.f32 %v471_v10, %v470_v55 }
  0xb1   : > { %v3781_v29 = vadd.f32 %v459_v28, %v458_v61  ;;  %v478_v30 = vrot.slane %v477_v13, 2  ;;  %v1228_v61 = vadd.f32 %v3654_v23, %v3636_v17  ;;  %v1225_v54 = vadd.f32 %v3668_v31, %v3646_v21 }
  0xb2   : > { %501 = vmax.xlane.f32.xlu0 %v500_v27  ;;  %v503_v42 = vsel %vm482_vm2, %v3779_v48, -inf  ;;  %v3785_v43 = vadd.f32 %v466_v2, %v465_v1  ;;  %v473_v46 = vrot.slane %v472_v38, 1  ;;  %v1231_v1 = vadd.f32 %v3676_v33, %v3672_v32 }
  0xb3   : > { %v504_v37 = vmax.f32 %v3776_v26, %v503_v42  ;;  %v479_v49 = vadd.f32 %v478_v30, %v477_v13  ;;  %v3808_v15 = vadd.f32 %v3736_v47, %v3729_v44  ;;  %v3810_v22 = vadd.f32 %v475_v50, %v468_v34 }
  0xb4   : > { %v507_v0 = vsel %vm482_vm2, %v3785_v43, -inf  ;;  %v3791_v53 = vadd.f32 %v473_v46, %v472_v38  ;;  %v3814_v57 = vadd.f32 %v3711_v35, %v3702_v24  ;;  %v3818_v17 = vadd.f32 %v3756_v63, %v3751_v56 }
  0xb5   : > { %505 = vmax.xlane.f32.xlu1 %v504_v37  ;;  %v508_v51 = vmax.f32 %v3781_v29, %v507_v0  ;;  %v480_v10 = vrot.slane %v479_v49, 1  ;;  %v3349_v21 = vmov 2   ;;  %v5131_v23 = vlaneseq }
  0xb6   : > { %2981 = vset.pattern.permute.xlu1 %v3349_v21  ;;  %2982 = vset.pattern.permute.xlu0 %v3349_v21 }
  0xb7   : > { %509 = vmax.xlane.f32.xlu0 %v508_v51  ;;  %v3793_v27 = vadd.f32 %v480_v10, %v479_v49  ;;  %v3823_v31 = vand.u32 127, %v5131_v23 }
  0xb9   : > { %v511_v55 = vsel %vm482_vm2, %v3793_v27, -inf  ;;  %v3826_v32 = vadd.s32 128, %v3823_v31 }
  0xba   : > { %v512_v13 = vmax.f32 %v3791_v53, %v511_v55 }
  0xbb   : > { %1223 = vadd.xlane.f32.xlu0 %v1222_v52 }
  0xbc   : > { %513 = vmax.xlane.f32.xlu1 %v512_v13 }
  0xbf   : > { %1229 = vadd.xlane.f32.xlu0 %v1228_v61 }
  0xc0   : > { %1226 = vadd.xlane.f32.xlu1 %v1225_v54 }
  0xc4   : > { %1232 = vadd.xlane.f32.xlu1 %v1231_v1 }
 0x131   : > { %v486_v33 = vpop.xlane.xlu0 %485 }
 0x132   : > { %v494_v44 = vpop.xlane.xlu1 %493  ;;  %vm515_vm3 = vcmp.eq.f32.partialorder %v3686_v58, %v486_v33  ;;  %vm516_vm4 = vcmp.eq.f32.partialorder %v3692_v5, %v486_v33 }
 0x133   : > { %vm519_vm5 = vcmp.eq.f32.partialorder %v3688_v60, %v494_v44  ;;  %vm520_vm6 = vcmp.eq.f32.partialorder %v3694_v18, %v494_v44  ;;  %v531_v24 = vsel %vm515_vm3, %v3823_v31, 196  ;;  %v532_v35 = vsel %vm516_vm4, %v3826_v32, 196 }
 0x134   : > { %v535_v47 = vsel %vm519_vm5, %v3823_v31, 196  ;;  %v536_v56 = vsel %vm520_vm6, %v3826_v32, 196  ;;  %v547_v63 = vsel %vm482_vm2, %v532_v35, 2147483647 }
 0x135   : > { %v581_v34 = vsel %vm482_vm2, %v536_v56, 2147483647  ;;  %vm548_vm7 = vcmp.lt.s32.totalorder %v531_v24, %v547_v63  ;;  %v490_v58 = vpop.xlane.xlu0 %489 }
 0x136   : > { %v498_v50 = vpop.xlane.xlu1 %497  ;;  %vm582_vm8 = vcmp.lt.s32.totalorder %v535_v47, %v581_v34  ;;  %vm517_vm9 = vcmp.eq.f32.partialorder %v3690_v62, %v490_v58  ;;  %vm518_vm10 = vcmp.eq.f32.partialorder %v3719_v39, %v490_v58  ;;  %v3847_v38 = vsel %vm548_vm7, %v531_v24, %v547_v63 }
 0x137   : > { %vm521_vm11 = vcmp.eq.f32.partialorder %v3721_v40, %v498_v50  ;;  %vm522_vm12 = vcmp.eq.f32.partialorder %v3723_v41, %v498_v50  ;;  %v533_v60 = vsel %vm517_vm9, %v3823_v31, 196  ;;  %v534_v5 = vsel %vm518_vm10, %v3826_v32, 196 }
 0x138   : > { %v537_v18 = vsel %vm521_vm11, %v3823_v31, 196  ;;  %v538_v28 = vsel %vm522_vm12, %v3826_v32, 196  ;;  %v564_v2 = vsel %vm482_vm2, %v534_v5, 2147483647  ;;  %v3849_v30 = vsel %vm582_vm8, %v535_v47, %v581_v34 }
 0x139   : > { %v598_v62 = vsel %vm482_vm2, %v538_v28, 2147483647  ;;  %vm565_vm13 = vcmp.lt.s32.totalorder %v533_v60, %v564_v2  ;;  %v551_v39 = vshra.s32 %v3847_v38, 16  ;;  %v585_v46 = vshra.s32 %v3849_v30, 16 }
 0x13a   : > { %vm599_vm14 = vcmp.lt.s32.totalorder %v537_v18, %v598_v62  ;;  %v3853_v40 = vsel %vm565_vm13, %v533_v60, %v564_v2  ;;  %v3921_v2 = vsub.s32 0, %v3593_v3 }
 0x13b   : > { %v3855_v41 = vsel %vm599_vm14, %v537_v18, %v598_v62  ;;  %v3857_v42 = vcvt.s32.f32 %v551_v39  ;;  %v568_v37 = vshra.s32 %v3853_v40, 16  ;;  %v3865_v10 = vcvt.s32.f32 %v585_v46  ;;  %v3923_v62 = vld [vmem:[#allocation7] ss:$0 sm:$0xff]  ;;  %v3925_v46 = vld [vmem:[#allocation7 + $0x1] ss:$0 sm:$0xff] }
 0x13c   : > { %v602_v0 = vshra.s32 %v3855_v41, 16 }
 0x13d   : > { %554 = vmin.xlane.f32.xlu0 %v3857_v42  ;;  %v3862_v49 = vcvt.s32.f32 %v568_v37  ;;  %v3927_v37 = vld [vmem:[#allocation7 + $0x2] ss:$0 sm:$0xff] }
 0x13e   : > { %v3873_v13 = vcvt.s32.f32 %v602_v0 }
 0x13f   : > { %v502_v51 = vpop.xlane.xlu0 %501  ;;  %571 = vmin.xlane.f32.xlu1 %v3862_v49 }
 0x140   : > { %vm523_vm15 = vcmp.eq.f32.partialorder %v3768_v45, %v502_v51  ;;  %vm524_vm3 = vcmp.eq.f32.partialorder %v3772_v59, %v502_v51 }
 0x141   : > { %v539_v52 = vsel %vm523_vm15, %v3823_v31, 196  ;;  %v540_v55 = vsel %vm524_vm3, %v3826_v32, 196  ;;  %588 = vmin.xlane.f32.xlu0 %v3865_v10 }
 0x142   : > { %v615_v61 = vsel %vm482_vm2, %v540_v55, 2147483647  ;;  %v506_v54 = vpop.xlane.xlu1 %505 }
 0x143   : > { %vm616_vm4 = vcmp.lt.s32.totalorder %v539_v52, %v615_v61  ;;  %vm525_vm5 = vcmp.eq.f32.partialorder %v3776_v26, %v506_v54  ;;  %vm526_vm6 = vcmp.eq.f32.partialorder %v3779_v48, %v506_v54  ;;  %605 = vmin.xlane.f32.xlu1 %v3873_v13 }
 0x144   : > { %v541_v45 = vsel %vm525_vm5, %v3823_v31, 196  ;;  %v542_v59 = vsel %vm526_vm6, %v3826_v32, 196  ;;  %v510_v1 = vpop.xlane.xlu0 %509  ;;  %v3881_v23 = vsel %vm616_vm4, %v539_v52, %v615_v61 }
 0x145   : > { %vm527_vm7 = vcmp.eq.f32.partialorder %v3781_v29, %v510_v1  ;;  %vm528_vm8 = vcmp.eq.f32.partialorder %v3785_v43, %v510_v1  ;;  %v619_v33 = vshra.s32 %v3881_v23, 16  ;;  %v632_v44 = vsel %vm482_vm2, %v542_v59, 2147483647 }
 0x146   : > { %v543_v26 = vsel %vm527_vm7, %v3823_v31, 196  ;;  %v544_v48 = vsel %vm528_vm8, %v3826_v32, 196  ;;  %vm633_vm9 = vcmp.lt.s32.totalorder %v541_v45, %v632_v44  ;;  %v550_v59 = vand.u32 65535, %v3847_v38 }
 0x147   : > { %v649_v24 = vsel %vm482_vm2, %v544_v48, 2147483647  ;;  %v3890_v35 = vcvt.s32.f32 %v619_v33  ;;  %v3892_v47 = vsel %vm633_vm9, %v541_v45, %v632_v44  ;;  %v567_v1 = vand.u32 65535, %v3853_v40 }
 0x148   : > { %vm650_vm10 = vcmp.lt.s32.totalorder %v543_v26, %v649_v24  ;;  %v636_v29 = vshra.s32 %v3892_v47, 16  ;;  %v1224_v28 = vpop.xlane.xlu0 %1223  ;;  %v552_v44 = vcvt.s32.f32 %v550_v59  ;;  %vm726_vm8 = vcmask 1040384  }
 0x149   : > { %622 = vmin.xlane.f32.xlu0 %v3890_v35  ;;  %v3896_v43 = vsel %vm650_vm10, %v543_v26, %v649_v24  ;;  %v514_v56 = vpop.xlane.xlu1 %513  ;;  %v584_v26 = vand.u32 65535, %v3849_v30  ;;  %vm728_vm9 = vcmask 548864  }
 0x14a   : > { %v3898_v63 = vcvt.s32.f32 %v636_v29  ;;  %v653_v34 = vshra.s32 %v3896_v43, 16  ;;  %vm529_vm11 = vcmp.eq.f32.partialorder %v3791_v53, %v514_v56  ;;  %vm530_vm12 = vcmp.eq.f32.partialorder %v3793_v27, %v514_v56 }
 0x14b   : > { %v545_v58 = vsel %vm529_vm11, %v3823_v31, 196  ;;  %v546_v50 = vsel %vm530_vm12, %v3826_v32, 196  ;;  %v569_v29 = vcvt.s32.f32 %v567_v1  ;;  %v601_v56 = vand.u32 65535, %v3855_v41 }
 0x14c   : > { %639 = vmin.xlane.f32.xlu1 %v3898_v63  ;;  %v3906_v60 = vcvt.s32.f32 %v653_v34  ;;  %v666_v5 = vsel %vm482_vm2, %v546_v50, 2147483647  ;;  %v635_v41 = vand.u32 65535, %v3892_v47 }
 0x14d   : > { %vm667_vm13 = vcmp.lt.s32.totalorder %v545_v58, %v666_v5  ;;  %v1227_v39 = vpop.xlane.xlu1 %1226  ;;  %v603_v30 = vcvt.s32.f32 %v601_v56 }
 0x14e   : > { %656 = vmin.xlane.f32.xlu0 %v3906_v60  ;;  %v3910_v18 = vsel %vm667_vm13, %v545_v58, %v666_v5  ;;  %v586_v58 = vcvt.s32.f32 %v584_v26  ;;  %v618_v5 = vand.u32 65535, %v3881_v23 }
 0x14f   : > { %v670_v53 = vshra.s32 %v3910_v18, 16 }
 0x150   : > { %1238 = vadd.xlane.f32.xlu1 %v3808_v15  ;;  %v1246_v15 = vmul.f32 0.0051020407, %v1224_v28  ;;  %v652_v28 = vand.u32 65535, %v3896_v43 }
 0x151   : > { %v3916_v27 = vcvt.s32.f32 %v670_v53  ;;  %v1233_v52 = vpop.xlane.xlu1 %1232 }
 0x152   : > { %1235 = vadd.xlane.f32.xlu0 %v3814_v57  ;;  %v1230_v57 = vpop.xlane.xlu0 %1229  ;;  %v1310_v0 = vmul.f32 %v3923_v62, %v1246_v15  ;;  %v1249_v54 = vmul.f32 0.0051020407, %v1233_v52  ;;  %v637_v15 = vcvt.s32.f32 %v635_v41 }
 0x153   : > { %v1248_v51 = vmul.f32 0.0051020407, %v1230_v57 }
 0x154   : > { %1244 = vadd.xlane.f32.xlu1 %v3810_v22  ;;  %v1247_v22 = vmul.f32 0.0051020407, %v1227_v39 }
 0x155   : > { %v1312_v61 = vmul.f32 %v3927_v37, %v1248_v51 }
 0x156   : > { %1241 = vadd.xlane.f32.xlu0 %v3818_v17  ;;  %v3930_v17 = vld [vmem:[#allocation7 + $0x3] ss:$0 sm:$0xff]  ;;  %v1311_v55 = vmul.f32 %v3925_v46, %v1247_v22  ;;  %v654_v22 = vcvt.s32.f32 %v652_v28 }
 0x157   : > { %v1313_v45 = vmul.f32 %v3930_v17, %v1249_v54 }
 0x158   : > { %673 = vmin.xlane.f32.xlu1 %v3916_v27 }
 0x169   : > { %1624 = vperm.xlu1 %2981, %v1310_v0  }
 0x16c   : > { %1628 = vperm.xlu0 %2982, %v1311_v55  }
 0x16d   : > { %1632 = vperm.xlu1 %2981, %v1312_v61  }
 0x171   : > { %1636 = vperm.xlu1 %2981, %v1313_v45  }
 0x1ca   : > { %v3937_v33 = vpop.xlane.xlu0 %554 }
 0x1cb   : > { %vm556_vm2 = vcmp.eq.f32.partialorder %v3857_v42, %v3937_v33 }
 0x1cc   : > { %v557_v48 = vsel %vm556_vm2, %v552_v44, inf  ;;  %v572_v24 = vpop.xlane.xlu1 %571 }
 0x1cd   : > { %558 = vmin.xlane.f32.xlu0 %v557_v48  ;;  %vm573_vm14 = vcmp.eq.f32.partialorder %v3862_v49, %v572_v24  ;;  %v620_v49 = vcvt.s32.f32 %v618_v5  ;;  %v578_v45 = vcvt.f32.s32 %v572_v24  ;;  %v774_v48 = vsub.s32 3, %v3593_v3 }
 0x1ce   : > { %v589_v34 = vpop.xlane.xlu0 %588  ;;  %v574_v38 = vsel %vm573_vm14, %v569_v29, inf }
 0x1cf   : > { %575 = vmin.xlane.f32.xlu1 %v574_v38  ;;  %vm590_vm15 = vcmp.eq.f32.partialorder %v3865_v10, %v589_v34  ;;  %v595_v59 = vcvt.f32.s32 %v589_v34  ;;  %v3976_v38 = vld [vmem:[#allocation6] sm:$0xf] }
 0x1d0   : > { %v591_v40 = vsel %vm590_vm15, %v586_v58, inf  ;;  %v606_v50 = vpop.xlane.xlu1 %605 }
 0x1d1   : > { %592 = vmin.xlane.f32.xlu0 %v591_v40  ;;  %vm607_vm3 = vcmp.eq.f32.partialorder %v3873_v13, %v606_v50  ;;  %v612_v1 = vcvt.f32.s32 %v606_v50  ;;  %v3979_v40 = vsub.s32 2, %v3593_v3  ;;  %v596_v24 = vshll.u32 %v595_v59, 16 }
 0x1d2   : > { %v608_v42 = vsel %vm607_vm3, %v603_v30, inf }
 0x1d3   : > { %609 = vmin.xlane.f32.xlu1 %v608_v42  ;;  %v613_v50 = vshll.u32 %v612_v1, 16 }
 0x1d6   : > { %v623_v53 = vpop.xlane.xlu0 %622 }
 0x1d7   : > { %vm624_vm4 = vcmp.eq.f32.partialorder %v3890_v35, %v623_v53  ;;  %v669_v35 = vand.u32 65535, %v3910_v18  ;;  %v561_v18 = vcvt.f32.s32 %v3937_v33  ;;  %v629_v44 = vcvt.f32.s32 %v623_v53 }
 0x1d8   : > { %v625_v39 = vsel %vm624_vm4, %v620_v49, inf  ;;  %v579_v33 = vshll.u32 %v578_v45, 16  ;;  %v3985_v53 = vrot.slane %v3976_v38, %v774_v48 }
 0x1d9   : > { %626 = vmin.xlane.f32.xlu0 %v625_v39  ;;  %v640_v10 = vpop.xlane.xlu1 %639  ;;  %v671_v51 = vcvt.s32.f32 %v669_v35  ;;  %v562_v30 = vshll.u32 %v561_v18, 16  ;;  %v630_v42 = vshll.u32 %v629_v44, 16 }
 0x1da   : > { %vm641_vm5 = vcmp.eq.f32.partialorder %v3898_v63, %v640_v10  ;;  %v646_v29 = vcvt.f32.s32 %v640_v10 }
 0x1db   : > { %v657_v57 = vpop.xlane.xlu0 %656  ;;  %v642_v13 = vsel %vm641_vm5, %v637_v15, inf }
 0x1dc   : > { %643 = vmin.xlane.f32.xlu1 %v642_v13  ;;  %vm658_vm6 = vcmp.eq.f32.partialorder %v3906_v60, %v657_v57  ;;  %v663_v56 = vcvt.f32.s32 %v657_v57  ;;  %v3987_v49 = vshll.u32 %v646_v29, 16  ;;  %v3995_v57 = vrot.slane %v3976_v38, %v3921_v2 }
 0x1dd   : > { %v659_v23 = vsel %vm658_vm6, %v654_v22, inf  ;;  %v3952_v47 = vpop.xlane.xlu1 %1238  ;;  %v3999_v13 = vrot.slane %v3976_v38, %v3979_v40 }
 0x1de   : > { %660 = vmin.xlane.f32.xlu0 %v659_v23  ;;  %v3989_v28 = vshll.u32 %v663_v56, 16 }
 0x1df   : > { %v3961_v52 = vpop.xlane.xlu0 %1235 }
 0x1e1   : > { %v3954_v0 = vpop.xlane.xlu1 %1244 }
 0x1e3   : > { %v3965_v60 = vpop.xlane.xlu0 %1241 }
 0x1e5   : > { %v3957_v43 = vpop.xlane.xlu1 %673 }
 0x1e6   : > { %vm675_vm7 = vcmp.eq.f32.partialorder %v3916_v27, %v3957_v43  ;;  %v770_v27 = vsub.s32 1, %v3593_v3 }
 0x1e7   : > { %v676_v63 = vsel %vm675_vm7, %v671_v51, inf }
 0x1e8   : > { %677 = vmin.xlane.f32.xlu1 %v676_v63  ;;  %v3982_v41 = vrot.slane %v3976_v38, %v770_v27 }
 0x1e9   : > { %v3963_v55 = vpop.permute.xlu1 %1624 }
 0x1eb   : > { %v3969_v54 = vpop.permute.xlu0 %1628 }
 0x1ed   : > { %v3967_v61 = vpop.permute.xlu1 %1632 }
 0x1f1   : > { %v3972_v26 = vpop.permute.xlu1 %1636 }
 0x25a   : > { %v559_v58 = vpop.xlane.xlu0 %558 }
 0x25b   : > { %v560_v34 = vcvt.f32.s32 %v559_v58 }
 0x25c   : > { %v576_v5 = vpop.xlane.xlu1 %575 }
 0x25d   : > { %v3991_v39 = vadd.s32 %v562_v30, %v560_v34  ;;  %v577_v10 = vcvt.f32.s32 %v576_v5 }
 0x25e   : > { %v593_v15 = vpop.xlane.xlu0 %592 }
 0x25f   : > { %vm683_vm10 = vcmp.eq.s32.totalorder %v3823_v31, %v3991_v39  ;;  %vm684_vm11 = vcmp.eq.s32.totalorder %v3826_v32, %v3991_v39  ;;  %v4005_v22 = vadd.s32 %v579_v33, %v577_v10  ;;  %v594_v23 = vcvt.f32.s32 %v593_v15 }
 0x260   : > { %v610_v35 = vpop.xlane.xlu1 %609  ;;  %v1166_v51 = vsel %vm683_vm10, %v3596_v4, 0.0  ;;  %v1167_v63 = vsel %vm684_vm11, %v3624_v14, 0.0  ;;  %v778_v18 = vsel %vm683_vm10, %v3982_v41, 0.0  ;;  %v779_v45 = vsel %vm684_vm11, %v3985_v53, 0.0 }
 0x261   : > { %vm685_vm12 = vcmp.eq.s32.totalorder %v3823_v31, %v4005_v22  ;;  %vm686_vm13 = vcmp.eq.s32.totalorder %v3826_v32, %v4005_v22  ;;  %v4027_v4 = vadd.s32 %v596_v24, %v594_v23  ;;  %v611_v59 = vcvt.f32.s32 %v610_v35 }
 0x262   : > { %v1182_v14 = vsel %vm368_vm0, %v1166_v51, 0.0  ;;  %v1183_v1 = vsel %vm376_vm1, %v1167_v63, 0.0  ;;  %v1168_v44 = vsel %vm685_vm12, %v3602_v7, 0.0  ;;  %v1169_v27 = vsel %vm686_vm13, %v3642_v20, 0.0 }
 0x263   : > { %vm687_vm2 = vcmp.eq.s32.totalorder %v3823_v31, %v4027_v4  ;;  %vm5103_vm14 = vcmp.eq.s32.totalorder %v3826_v32, %v4027_v4  ;;  %v4043_v48 = vadd.s32 %v613_v50, %v611_v59  ;;  %v1184_v29 = vadd.f32 %v1183_v1, %v1182_v14 }
 0x264   : > { %v1187_v56 = vsel %vm368_vm0, %v1168_v44, 0.0  ;;  %v1188_v58 = vsel %vm376_vm1, %v1169_v27, 0.0  ;;  %v1170_v7 = vsel %vm687_vm2, %v3599_v6, 0.0  ;;  %v1171_v20 = vsel %vm5103_vm14, %v3632_v16, 0.0 }
 0x265   : > { %vm5102_vm15 = vcmp.eq.s32.totalorder %v3823_v31, %v4043_v48  ;;  %vm690_vm3 = vcmp.eq.s32.totalorder %v3826_v32, %v4043_v48  ;;  %1185 = vadd.xlane.f32.xlu0 %v1184_v29  ;;  %v1189_v30 = vadd.f32 %v1188_v58, %v1187_v56  ;;  %v1192_v33 = vsel %vm368_vm0, %v1170_v7, 0.0 }
 0x266   : > { %v627_v24 = vpop.xlane.xlu0 %626  ;;  %v1193_v34 = vsel %vm376_vm1, %v1171_v20, 0.0  ;;  %v1172_v6 = vsel %vm5102_vm15, %v3605_v8, 0.0  ;;  %v1173_v16 = vsel %vm690_vm3, %v3659_v25, 0.0  ;;  %v794_v50 = vsel %vm726_vm8, %v778_v18, 0.0 }
 0x267   : > { %v628_v5 = vcvt.f32.s32 %v627_v24  ;;  %1190 = vadd.xlane.f32.xlu1 %v1189_v30  ;;  %v1194_v10 = vadd.f32 %v1193_v34, %v1192_v33  ;;  %v1197_v15 = vsel %vm368_vm0, %v1172_v6, 0.0  ;;  %v1198_v23 = vsel %vm376_vm1, %v1173_v16, 0.0 }
 0x268   : > { %v1199_v35 = vadd.f32 %v1198_v23, %v1197_v15  ;;  %v795_v51 = vsel %vm728_vm9, %v779_v45, 0.0  ;;  %v780_v8 = vsel %vm685_vm12, %v3982_v41, 0.0  ;;  %v781_v25 = vsel %vm686_vm13, %v3985_v53, 0.0  ;;  %v5132_v23 = vld [vmem:[#allocation18_spill] sm:$0xff] }
 0x269   : > { %v4081_v63 = vadd.s32 %v630_v42, %v628_v5  ;;  %v644_v18 = vpop.xlane.xlu1 %643  ;;  %1195 = vadd.xlane.f32.xlu0 %v1194_v10  ;;  %v4083_v59 = vadd.f32 %v795_v51, %v794_v50  ;;  %v799_v14 = vsel %vm726_vm8, %v780_v8, 0.0  ;;  %v800_v45 = vsel %vm728_vm9, %v781_v25, 0.0 }
 0x26a   : > { %v645_v1 = vcvt.f32.s32 %v644_v18  ;;  %v4087_v44 = vadd.f32 %v800_v45, %v799_v14  ;;  %v782_v27 = vsel %vm687_vm2, %v3982_v41, 0.0  ;;  %v783_v42 = vsel %vm5103_vm14, %v3985_v53, 0.0 }
 0x26b   : > { %vm691_vm4 = vcmp.eq.s32.totalorder %v3823_v31, %v4081_v63  ;;  %vm692_vm5 = vcmp.eq.s32.totalorder %v3826_v32, %v4081_v63  ;;  %v661_v29 = vpop.xlane.xlu0 %660  ;;  %1200 = vadd.xlane.f32.xlu1 %v1199_v35  ;;  %v804_v56 = vsel %vm726_vm8, %v782_v27, 0.0  ;;  %v805_v58 = vsel %vm728_vm9, %v783_v42, 0.0 }
 0x26c   : > { %v4104_v7 = vadd.s32 %v3987_v49, %v645_v1  ;;  %v662_v20 = vcvt.f32.s32 %v661_v29  ;;  %v1174_v30 = vsel %vm691_vm4, %v3608_v9, 0.0  ;;  %v1175_v33 = vsel %vm692_vm5, %v3698_v19, 0.0 }
 0x26d   : > { %v1202_v24 = vsel %vm368_vm0, %v1174_v30, 0.0  ;;  %v1203_v34 = vsel %vm376_vm1, %v1175_v33, 0.0  ;;  %v4116_v6 = vadd.f32 %v805_v58, %v804_v56  ;;  %v784_v49 = vsel %vm5102_vm15, %v3982_v41, 0.0 }
 0x26e   : > { %vm693_vm6 = vcmp.eq.s32.totalorder %v3823_v31, %v4104_v7  ;;  %vm694_vm7 = vcmp.eq.s32.totalorder %v3826_v32, %v4104_v7  ;;  %v4127_v9 = vadd.s32 %v3989_v28, %v662_v20  ;;  %v1204_v19 = vadd.f32 %v1203_v34, %v1202_v24 }
 0x26f   : > { %v1176_v16 = vsel %vm693_vm6, %v3614_v11, 0.0  ;;  %v1177_v50 = vsel %vm694_vm7, %v3715_v36, 0.0  ;;  %v785_v5 = vsel %vm690_vm3, %v3985_v53, 0.0  ;;  %v809_v10 = vsel %vm726_vm8, %v784_v49, 0.0 }
 0x270   : > { %vm695_vm15 = vcmp.eq.s32.totalorder %v3823_v31, %v4127_v9  ;;  %vm696_vm14 = vcmp.eq.s32.totalorder %v3826_v32, %v4127_v9  ;;  %1205 = vadd.xlane.f32.xlu0 %v1204_v19  ;;  %v1207_v11 = vsel %vm368_vm0, %v1176_v16, 0.0  ;;  %v1208_v28 = vsel %vm376_vm1, %v1177_v50, 0.0 }
 0x271   : > { %v1209_v15 = vadd.f32 %v1208_v28, %v1207_v11  ;;  %v1178_v36 = vsel %vm695_vm15, %v3617_v12, 0.0  ;;  %v1179_v35 = vsel %vm696_vm14, %v5132_v23, 0.0  ;;  %v810_v51 = vsel %vm728_vm9, %v785_v5, 0.0 }
 0x272   : > { %v1212_v8 = vsel %vm368_vm0, %v1178_v36, 0.0  ;;  %v1213_v25 = vsel %vm376_vm1, %v1179_v35, 0.0  ;;  %v4159_v18 = vadd.f32 %v810_v51, %v809_v10  ;;  %v786_v14 = vsel %vm691_vm4, %v3982_v41, 0.0  ;;  %v4223_v35 = vld [vmem:[#allocation7 + $0x5] ss:$0 sm:$0xff] }
 0x273   : > { %1210 = vadd.xlane.f32.xlu1 %v1209_v15  ;;  %v1214_v12 = vadd.f32 %v1213_v25, %v1212_v8  ;;  %v787_v45 = vsel %vm692_vm5, %v3985_v53, 0.0  ;;  %v814_v1 = vsel %vm726_vm8, %v786_v14, 0.0  ;;  %v788_v27 = vsel %vm693_vm6, %v3982_v41, 0.0 }
 0x274   : > { %v815_v42 = vsel %vm728_vm9, %v787_v45, 0.0  ;;  %v789_v29 = vsel %vm694_vm7, %v3985_v53, 0.0  ;;  %v819_v56 = vsel %vm726_vm8, %v788_v27, 0.0  ;;  %v790_v58 = vsel %vm695_vm15, %v3982_v41, 0.0 }
 0x275   : > { %1215 = vadd.xlane.f32.xlu0 %v1214_v12  ;;  %v4184_v20 = vadd.f32 %v815_v42, %v814_v1  ;;  %v820_v30 = vsel %vm728_vm9, %v789_v29, 0.0  ;;  %v791_v33 = vsel %vm696_vm14, %v3985_v53, 0.0  ;;  %v824_v24 = vsel %vm726_vm8, %v790_v58, 0.0  ;;  %v678_v9 = vpop.xlane.xlu1 %677 }
 0x276   : > { %v4192_v34 = vadd.f32 %v820_v30, %v819_v56  ;;  %v825_v49 = vsel %vm728_vm9, %v791_v33, 0.0  ;;  %v710_v19 = vsel %vm683_vm10, %v3995_v57, 0.0  ;;  %v711_v50 = vsel %vm684_vm11, %v3999_v13, 0.0 }
 0x277   : > { %v4199_v16 = vadd.f32 %v825_v49, %v824_v24  ;;  %v727_v5 = vsel %vm726_vm8, %v710_v19, 0.0  ;;  %v712_v10 = vsel %vm685_vm12, %v3995_v57, 0.0  ;;  %v729_v11 = vsel %vm728_vm9, %v711_v50, 0.0 }
 0x278   : > { %v713_v28 = vsel %vm686_vm13, %v3999_v13, 0.0  ;;  %v733_v15 = vsel %vm726_vm8, %v712_v10, 0.0  ;;  %v4216_v36 = vadd.f32 %v729_v11, %v727_v5  ;;  %v714_v23 = vsel %vm687_vm2, %v3995_v57, 0.0  ;;  %v4271_v5 = vld [vmem:[#allocation7 + $0x4] ss:$0 sm:$0xff] }
 0x279   : > { %v734_v39 = vsel %vm728_vm9, %v713_v28, 0.0  ;;  %vm5133_vm10 = vcmp.eq.s32.totalorder %v3826_v32, %v4027_v4  ;;  %v738_v8 = vsel %vm726_vm8, %v714_v23, 0.0  ;;  %v1251_v25 = vmul.f32 0.0051020407, %v3952_v47 }
 0x27a   : > { %v735_v51 = vadd.f32 %v734_v39, %v733_v15  ;;  %v715_v22 = vsel %vm5133_vm10, %v3999_v13, 0.0  ;;  %vm5134_vm11 = vcmp.eq.s32.totalorder %v3823_v31, %v4043_v48  ;;  %v717_v1 = vsel %vm690_vm3, %v3999_v13, 0.0 }
 0x27b   : > { %v739_v14 = vsel %vm728_vm9, %v715_v22, 0.0  ;;  %v716_v12 = vsel %vm5134_vm11, %v3995_v57, 0.0  ;;  %v718_v47 = vsel %vm691_vm4, %v3995_v57, 0.0  ;;  %v744_v27 = vsel %vm728_vm9, %v717_v1, 0.0  ;;  %v5136_v1 = vld [vmem:[#allocation19_spill] sm:$0xff] }
 0x27c   : > { %v740_v45 = vadd.f32 %v739_v14, %v738_v8  ;;  %v743_v4 = vsel %vm726_vm8, %v716_v12, 0.0  ;;  %v719_v42 = vsel %vm692_vm5, %v3999_v13, 0.0  ;;  %v748_v29 = vsel %vm726_vm8, %v718_v47, 0.0  ;;  %v5135_v12 = vld [vmem:[#allocation17_spill] sm:$0xff] }
 0x27d   : > { %v720_v48 = vsel %vm693_vm6, %v3995_v57, 0.0  ;;  %v745_v56 = vadd.f32 %v744_v27, %v743_v4  ;;  %v749_v58 = vsel %vm728_vm9, %v719_v42, 0.0  ;;  %v721_v30 = vsel %vm694_vm7, %v3999_v13, 0.0 }
 0x27e   : > { %v753_v33 = vsel %vm726_vm8, %v720_v48, 0.0  ;;  %v750_v24 = vadd.f32 %v749_v58, %v748_v29  ;;  %v754_v63 = vsel %vm728_vm9, %v721_v30, 0.0  ;;  %v722_v49 = vsel %vm695_vm15, %v3995_v57, 0.0 }
 0x27f   : > { %v723_v19 = vsel %vm696_vm14, %v3999_v13, 0.0  ;;  %v1315_v50 = vmul.f32 %v4223_v35, %v1251_v25  ;;  %v755_v7 = vadd.f32 %v754_v63, %v753_v33  ;;  %v758_v10 = vsel %vm726_vm8, %v722_v49, 0.0 }
 0x280   : > { %v759_v11 = vsel %vm728_vm9, %v723_v19, 0.0  ;;  %v1250_v15 = vmul.f32 0.0051020407, %v3961_v52  ;;  %v3350_v39 = vmov 3   ;;  %v680_v22 = vcvt.f32.s32 %v3957_v43 }
 0x281   : > { %v760_v28 = vadd.f32 %v759_v11, %v758_v10  ;;  %v679_v8 = vcvt.f32.s32 %v678_v9  ;;  %v4344_v9 = vld [vmem:[%s3586_s6 + $0x8] sm:$0xf] }
 0x282   : > { %v1314_v23 = vmul.f32 %v4271_v5, %v1250_v15  ;;  %v681_v25 = vshll.u32 %v680_v22, 16 }
 0x284   : > { %1644 = vperm.xlu1 %2981, %v1315_v50   ;;  %v682_v14 = vadd.s32 %v681_v25, %v679_v8  ;;  %v4326_v50 = vld [vmem:[%s3586_s6] sm:$0xf] }
 0x286   : > { %vm697_vm12 = vcmp.eq.s32.totalorder %v3823_v31, %v682_v14  ;;  %vm698_vm13 = vcmp.eq.s32.totalorder %v3826_v32, %v682_v14  ;;  %v1252_v31 = vmul.f32 0.0051020407, %v3965_v60 }
 0x287   : > { %v1180_v52 = vsel %vm697_vm12, %v5135_v12, 0.0  ;;  %v1181_v4 = vsel %vm698_vm13, %v5136_v1, 0.0  ;;  %v792_v42 = vsel %vm697_vm12, %v3982_v41, 0.0  ;;  %v793_v29 = vsel %vm698_vm13, %v3985_v53, 0.0 }
 0x288   : > { %2985 = vset.pattern.permute.xlu1 %v3350_v39  ;;  %v1217_v47 = vsel %vm368_vm0, %v1180_v52, 0.0  ;;  %v1218_v27 = vsel %vm376_vm1, %v1181_v4, 0.0  ;;  %v829_v48 = vsel %vm726_vm8, %v792_v42, 0.0  ;;  %v724_v41 = vsel %vm697_vm12, %v3995_v57, 0.0 }
 0x289   : > { %v1219_v43 = vadd.f32 %v1218_v27, %v1217_v47  ;;  %v725_v53 = vsel %vm698_vm13, %v3999_v13, 0.0 }
 0x28b   : > { %1640 = vperm.xlu0 %2982, %v1314_v23  }
 0x28f   : > { %2983 = vset.pattern.permute.xlu0 %v3350_v39 }
 0x2a8   : > { %1220 = vadd.xlane.f32.xlu1 %v1219_v43 }
 0x2aa   : > { %797 = vadd.xlane.f32.xlu0 %v4083_v59  ;;  %v830_v59 = vsel %vm728_vm9, %v793_v29, 0.0 }
 0x2ac   : > { %802 = vadd.xlane.f32.xlu1 %v4087_v44  ;;  %v831_v44 = vadd.f32 %v830_v59, %v829_v48 }
 0x2ae   : > { %807 = vadd.xlane.f32.xlu0 %v4116_v6  ;;  %v763_v6 = vsel %vm726_vm8, %v724_v41, 0.0  ;;  %v4356_v41 = vld [vmem:[%s3586_s6 + $0xc] sm:$0xf] }
 0x2b0   : > { %812 = vadd.xlane.f32.xlu1 %v4159_v18  ;;  %v764_v18 = vsel %vm728_vm9, %v725_v53, 0.0 }
 0x2b2   : > { %817 = vadd.xlane.f32.xlu0 %v4184_v20  ;;  %v765_v20 = vadd.f32 %v764_v18, %v763_v6 }
 0x2b4   : > { %822 = vadd.xlane.f32.xlu1 %v4192_v34  ;;  %v3159_v34 = vld [vmem:[#allocation7 + $0x6] ss:$0 sm:$0xff] }
 0x2b6   : > { %827 = vadd.xlane.f32.xlu0 %v4199_v16 }
 0x2b8   : > { %832 = vadd.xlane.f32.xlu1 %v831_v44 }
 0x2ba   : > { %731 = vadd.xlane.f32.xlu0 %v4216_v36 }
 0x2bc   : > { %736 = vadd.xlane.f32.xlu1 %v735_v51  ;;  %v1316_v51 = vmul.f32 %v3159_v34, %v1252_v31 }
 0x2be   : > { %741 = vadd.xlane.f32.xlu0 %v740_v45 }
 0x2c0   : > { %746 = vadd.xlane.f32.xlu1 %v745_v56 }
 0x2c2   : > { %751 = vadd.xlane.f32.xlu0 %v750_v24  ;;  %v3351_v24 = vmov 269488144  }
 0x2c3   : > { %v843_v63 = vunpack.c.l.s4 %v3351_v24 }
 0x2c4   : > { %756 = vadd.xlane.f32.xlu1 %v755_v7  ;;  %v5138_v7 = vld [vmem:[#allocation16_spill] sm:$0xff] }
 0x2c5   : > { %v844_v49 = vunpack.c.0.s8 %v843_v63 }
 0x2c6   : > { %761 = vadd.xlane.f32.xlu0 %v760_v28  ;;  %v3160_v28 = vld [vmem:[#allocation7 + $0x7] ss:$0 sm:$0xff] }
 0x2c8   : > { %766 = vadd.xlane.f32.xlu1 %v765_v20 }
 0x2f2   : > { %v1186_v16 = vpop.xlane.xlu0 %1185 }
 0x2f3   : > { %v1302_v36 = vmul.f32 %v3923_v62, %v1186_v16 }
 0x2f4   : > { %v1191_v57 = vpop.xlane.xlu1 %1190 }
 0x2f5   : > { %1320 = vperm.xlu0 %2983, %v1302_v36   ;;  %v1303_v32 = vmul.f32 %v3925_v46, %v1191_v57 }
 0x2f6   : > { %v1196_v13 = vpop.xlane.xlu0 %1195 }
 0x2f7   : > { %1324 = vperm.xlu1 %2985, %v1303_v32   ;;  %v1304_v45 = vmul.f32 %v3927_v37, %v1196_v13 }
 0x2f8   : > { %v1201_v56 = vpop.xlane.xlu1 %1200 }
 0x2f9   : > { %2984 = vset.pattern.permute.xlu0 %v3349_v21  ;;  %v1305_v58 = vmul.f32 %v3930_v17, %v1201_v56  ;;  %v4321_v17 = vsub.s32 %v844_v49, %v3593_v3  ;;  %v4337_v3 = vld [vmem:[%s3586_s6 + $0x4] sm:$0xf] }
 0x2fa   : > { %1648 = vperm.xlu0 %2984, %v1316_v51  }
 0x2fb   : > { %1328 = vperm.xlu1 %2985, %v1304_v45   ;;  %5137 = vst [vmem:[#allocation18_spill] sm:$0xff] %v4321_v17  ;;  %v1660_v19 = vrot.slane %v3963_v55, %v4321_v17  ;;  %v1674_v11 = vrot.slane %v3967_v61, %v4321_v17  ;;  %v1253_v61 = vmul.f32 0.0051020407, %v3954_v0  ;;  %v1681_v4 = vrot.slane %v3972_v26, %v4321_v17 }
 0x2fd   : > { %v1206_v62 = vpop.xlane.xlu0 %1205  ;;  %v1317_v43 = vmul.f32 %v3160_v28, %v1253_v61  ;;  %v1721_v53 = vmul.f32 %v4356_v41, %v1681_v4 }
 0x2fe   : > { %v1306_v60 = vmul.f32 %v4271_v5, %v1206_v62  ;;  %v1718_v5 = vmul.f32 %v4326_v50, %v1660_v19 }
 0x2ff   : > { %1332 = vperm.xlu1 %2985, %v1305_v58   ;;  %v1764_v13 = vrot.slane %v1721_v53, %v5138_v7 }
 0x300   : > { %v1211_v30 = vpop.xlane.xlu1 %1210  ;;  %v1740_v10 = vrot.slane %v1718_v5, %v5138_v7 }
 0x301   : > { %v1307_v46 = vmul.f32 %v4223_v35, %v1211_v30  ;;  %v1667_v35 = vrot.slane %v3969_v54, %v4321_v17  ;;  %v1720_v54 = vmul.f32 %v4344_v9, %v1674_v11  ;;  %v1856_v19 = vsel %vm368_vm0, %v1764_v13, 0.0 }
 0x302   : > { %v1216_v33 = vpop.xlane.xlu0 %1215  ;;  %v1814_v23 = vsel %vm368_vm0, %v1740_v10, 0.0  ;;  %v1741_v14 = vcombine.high %v1740_v10, %v1740_v10  ;;  %v1765_v11 = vcombine.high %v1764_v13, %v1764_v13 }
 0x303   : > { %1336 = vperm.xlu1 %2985, %v1306_v60   ;;  %v1308_v37 = vmul.f32 %v3159_v34, %v1216_v33  ;;  %v1719_v39 = vmul.f32 %v4337_v3, %v1667_v35  ;;  %v1815_v12 = vrot.slane %v1814_v23, 4  ;;  %v1756_v1 = vrot.slane %v1720_v54, %v5138_v7 }
 0x304   : > { %v4334_v15 = vpop.permute.xlu1 %1644  ;;  %v1821_v29 = vsel %vm376_vm1, %v1741_v14, 0.0 }
 0x305   : > { %v1748_v8 = vrot.slane %v1719_v39, %v5138_v7  ;;  %v1816_v42 = vadd.f32 %v1815_v12, %v1814_v23  ;;  %v1757_v0 = vcombine.high %v1756_v1, %v1756_v1  ;;  %v1842_v44 = vsel %vm368_vm0, %v1756_v1, 0.0 }
 0x306   : > { %v1822_v20 = vrot.slane %v1821_v29, 4  ;;  %v1843_v36 = vrot.slane %v1842_v44, 4  ;;  %v1695_v56 = vrot.slane %v4334_v15, %v4321_v17  ;;  %v4384_v15 = vld [vmem:[%s3586_s6 + $0x14] sm:$0xf]  ;;  %v4388_v23 = vstv %s4361_s26 }
 0x307   : > { %1340 = vperm.xlu1 %2985, %v1307_v46   ;;  %v1828_v27 = vsel %vm368_vm0, %v1748_v8, 0.0  ;;  %v1749_v48 = vcombine.high %v1748_v8, %v1748_v8  ;;  %v1817_v16 = vrot.slane %v1816_v42, 2  ;;  %v1849_v32 = vsel %vm376_vm1, %v1757_v0, 0.0 }
 0x308   : > { %v1829_v26 = vrot.slane %v1828_v27, 4  ;;  %v1823_v62 = vadd.f32 %v1822_v20, %v1821_v29  ;;  %v1850_v24 = vrot.slane %v1849_v32, 4  ;;  %v1723_v39 = vmul.f32 %v4384_v15, %v1695_v56 }
 0x309   : > { %v1835_v31 = vsel %vm376_vm1, %v1749_v48, 0.0  ;;  %v4371_v33 = vadd.f32 %v1817_v16, %v1816_v42  ;;  %v4404_v29 = vsel %vm376_vm1, %v1765_v11, 0.0 }
 0x30a   : > { %v4340_v55 = vpop.permute.xlu0 %1640  ;;  %v1830_v45 = vadd.f32 %v1829_v26, %v1828_v27  ;;  %v1836_v60 = vrot.slane %v1835_v31, 4  ;;  %v4398_v12 = vadd.f32 %v1850_v24, %v1849_v32 }
 0x30b   : > { %1344 = vperm.xlu1 %2985, %v1308_v37   ;;  %v4373_v37 = vadd.f32 %v1843_v36, %v1842_v44  ;;  %v1819_v42 = vrot.slane %v4371_v33, 1  ;;  %v1688_v20 = vrot.slane %v4340_v55, %v4321_v17  ;;  %v4428_v55 = vstv %s4392_s5 }
 0x30c   : > { %v4394_v8 = vadd.f32 %v1836_v60, %v1835_v31 }
 0x30d   : > { %v1845_v14 = vrot.slane %v4373_v37, 2 }
 0x30e   : > { %v1838_v53 = vrot.slane %v4394_v8, 2 }
 0x335   : > { %v1221_v22 = vpop.xlane.xlu1 %1220 }
 0x336   : > { %v1309_v25 = vmul.f32 %v3160_v28, %v1221_v22  ;;  %v1831_v28 = vrot.slane %v1830_v45, 2  ;;  %v1824_v22 = vrot.slane %v1823_v62, 2 }
 0x337   : > { %v798_v52 = vpop.xlane.xlu0 %797 }
 0x338   : > { %1348 = vperm.xlu1 %2985, %v1309_v25   ;;  %v937_v6 = vrot.slane %v798_v52, %v4321_v17  ;;  %v1857_v52 = vrot.slane %v1856_v19, 4  ;;  %v4406_v48 = vadd.f32 %v1831_v28, %v1830_v45  ;;  %v4420_v31 = vadd.f32 %v1824_v22, %v1823_v62 }
 0x339   : > { %v803_v47 = vpop.xlane.xlu1 %802 }
 0x33a   : > { %v944_v34 = vrot.slane %v803_v47, %v4321_v17  ;;  %v987_v51 = vrot.slane %v937_v6, 7  ;;  %v4434_v24 = vadd.f32 %v1857_v52, %v1856_v19 }
 0x33b   : > { %v808_v59 = vpop.xlane.xlu0 %807 }
 0x33c   : > { %2986 = vset.pattern.permute.xlu1 %v3349_v21  ;;  %v951_v21 = vrot.slane %v808_v59, %v4321_v17  ;;  %v988_v30 = vrot.slane %v944_v34, 7  ;;  %v1003_v5 = vsub.f32 %v3976_v38, %v987_v51  ;;  %v1780_v59 = vrot.slane %v1723_v39, %v5138_v7 }
 0x33d   : > { %v813_v18 = vpop.xlane.xlu1 %812  ;;  %1652 = vperm.xlu1 %2986, %v1317_v43   ;;  %v4417_v34 = vstv %s4375_s9 }
 0x33e   : > { %v958_v46 = vrot.slane %v813_v18, %v4321_v17  ;;  %v989_v35 = vrot.slane %v951_v21, 7  ;;  %v1004_v25 = vsub.f32 %v3976_v38, %v988_v30  ;;  %v1012_v47 = vmul.f32 %v4388_v23, %v1003_v5 }
 0x33f   : > { %v818_v57 = vpop.xlane.xlu0 %817  ;;  %v1781_v21 = vcombine.high %v1780_v59, %v1780_v59  ;;  %v4447_v19 = vsel %vm368_vm0, %v1780_v59, 0.0 }
 0x340   : > { %v965_v63 = vrot.slane %v818_v57, %v4321_v17  ;;  %v990_v61 = vrot.slane %v958_v46, 7  ;;  %v1005_v27 = vsub.f32 %v3976_v38, %v989_v35  ;;  %v1013_v6 = vmul.f32 %v4388_v23, %v1004_v25 }
 0x341   : > { %v823_v58 = vpop.xlane.xlu1 %822  ;;  %v1053_v57 = vmul.f32 %v1012_v47, %v1012_v47  ;;  %v1864_v25 = vrot.slane %v4404_v29, 4 }
 0x342   : > { %v972_v10 = vrot.slane %v823_v58, %v4321_v17  ;;  %v991_v1 = vrot.slane %v965_v63, 7  ;;  %v1006_v26 = vsub.f32 %v3976_v38, %v990_v61  ;;  %v1014_v32 = vmul.f32 %v4388_v23, %v1005_v27  ;;  %v4437_v63 = vld [vmem:[%s3586_s6 + $0x10] sm:$0xf] }
 0x343   : > { %v4378_v49 = vpop.xlane.xlu0 %827  ;;  %v1054_v60 = vmul.f32 %v1013_v6, %v1013_v6  ;;  %v1722_v5 = vmul.f32 %v4437_v63, %v1688_v20  ;;  %v1061_v11 = vmul.f32 %v1053_v57, %v4417_v34 }
 0x344   : > { %v992_v43 = vrot.slane %v972_v10, 7  ;;  %v1007_v16 = vsub.f32 %v3976_v38, %v991_v1  ;;  %v979_v45 = vrot.slane %v4378_v49, %v4321_v17  ;;  %v1015_v62 = vmul.f32 %v4388_v23, %v1006_v26 }
 0x345   : > { %v4390_v54 = vpop.xlane.xlu1 %832  ;;  %v1055_v28 = vmul.f32 %v1014_v32, %v1014_v32  ;;  %v4451_v1 = vsel %vm376_vm1, %v1781_v21, 0.0 }
 0x346   : > { %v1008_v13 = vsub.f32 %v3976_v38, %v992_v43  ;;  %v1016_v49 = vmul.f32 %v4388_v23, %v1007_v16  ;;  %v993_v61 = vrot.slane %v979_v45, 7  ;;  %v1056_v47 = vmul.f32 %v1015_v62, %v1015_v62 }
 0x347   : > { %v732_v4 = vpop.xlane.xlu0 %731  ;;  %v1063_v20 = vmul.f32 %v1055_v28, %v4417_v34 }
 0x348   : > { %v848_v0 = vrot.slane %v732_v4, %v4321_v17  ;;  %v1017_v39 = vmul.f32 %v4388_v23, %v1008_v13  ;;  %v1062_v4 = vmul.f32 %v1054_v60, %v4417_v34  ;;  %v1009_v57 = vsub.f32 %v3976_v38, %v993_v61 }
 0x349   : > { %v737_v44 = vpop.xlane.xlu1 %736  ;;  %v1064_v45 = vmul.f32 %v1056_v47, %v4417_v34 }
 0x34a   : > { %v855_v18 = vrot.slane %v737_v44, %v4321_v17  ;;  %v906_v56 = vsub.f32 %v3976_v38, %v848_v0  ;;  %v1772_v0 = vrot.slane %v1722_v5, %v5138_v7  ;;  %v1057_v44 = vmul.f32 %v1016_v49, %v1016_v49 }
 0x34b   : > { %v742_v36 = vpop.xlane.xlu0 %741  ;;  %v1058_v16 = vmul.f32 %v1017_v39, %v1017_v39  ;;  %v1071_v21 = vmul.f32 1.442695, %v1062_v4  ;;  %v1073_v5 = vmul.f32 1.442695, %v1063_v20 }
 0x34c   : > { %v862_v51 = vrot.slane %v742_v36, %v4321_v17  ;;  %v907_v30 = vsub.f32 %v3976_v38, %v855_v18  ;;  %v915_v52 = vmul.f32 %v4428_v55, %v906_v56  ;;  %v1069_v18 = vmul.f32 1.442695, %v1061_v11 }
 0x34d   : > { %v747_v58 = vpop.xlane.xlu1 %746  ;;  %v1065_v60 = vmul.f32 %v1057_v44, %v4417_v34  ;;  %v1066_v49 = vmul.f32 %v1058_v16, %v4417_v34  ;;  %v1018_v11 = vmul.f32 %v4388_v23, %v1009_v57  ;;  %v1773_v61 = vcombine.high %v1772_v0, %v1772_v0 }
 0x34e   : > { %v869_v46 = vrot.slane %v747_v58, %v4321_v17  ;;  %v908_v35 = vsub.f32 %v3976_v38, %v862_v51  ;;  %v916_v27 = vmul.f32 %v4428_v55, %v907_v30  ;;  %v1020_v32 = vmul.f32 %v915_v52, %v915_v52 }
 0x34f   : > { %v752_v10 = vpop.xlane.xlu0 %751  ;;  %2993 = vpow2.f32 %v1069_v18  ;;  %v1075_v52 = vmul.f32 1.442695, %v1064_v45  ;;  %v1077_v47 = vmul.f32 1.442695, %v1065_v60  ;;  %v1059_v20 = vmul.f32 %v1018_v11, %v1018_v11 }
 0x350   : > { %v909_v22 = vsub.f32 %v3976_v38, %v869_v46  ;;  %v917_v6 = vmul.f32 %v4428_v55, %v908_v35  ;;  %v876_v59 = vrot.slane %v752_v10, %v4321_v17  ;;  %v1021_v56 = vmul.f32 %v916_v27, %v916_v27 }
 0x351   : > { %v757_v43 = vpop.xlane.xlu1 %756  ;;  %v1029_v28 = vmul.f32 %v4417_v34, %v1020_v32  ;;  %2995 = vpow2.f32 %v1071_v21  ;;  %v1877_v57 = vsel %vm376_vm1, %v1773_v61, 0.0  ;;  %v1892_v21 = vrot.slane %v4451_v1, 4 }
 0x352   : > { %v918_v36 = vmul.f32 %v4428_v55, %v909_v22  ;;  %v910_v13 = vsub.f32 %v3976_v38, %v876_v59  ;;  %v883_v51 = vrot.slane %v757_v43, %v4321_v17  ;;  %v1022_v62 = vmul.f32 %v917_v6, %v917_v6 }
 0x353   : > { %v762_v26 = vpop.xlane.xlu0 %761  ;;  %v1030_v4 = vmul.f32 %v4417_v34, %v1021_v56  ;;  %v1870_v6 = vsel %vm368_vm0, %v1772_v0, 0.0  ;;  %v1079_v59 = vmul.f32 1.442695, %v1066_v49  ;;  %2997 = vpow2.f32 %v1073_v5 }
 0x354   : > { %v890_v58 = vrot.slane %v762_v26, %v4321_v17  ;;  %v919_v30 = vmul.f32 %v4428_v55, %v910_v13  ;;  %v911_v46 = vsub.f32 %v3976_v38, %v883_v51  ;;  %v1023_v35 = vmul.f32 %v918_v36, %v918_v36 }
 0x355   : > { %v1031_v27 = vmul.f32 %v4417_v34, %v1022_v62  ;;  %v1037_v16 = vmul.f32 1.442695, %v1029_v28  ;;  %v1885_v36 = vrot.slane %v4447_v19, 4  ;;  %2999 = vpow2.f32 %v1075_v52 }
 0x356   : > { %v912_v10 = vsub.f32 %v3976_v38, %v890_v58  ;;  %v1024_v39 = vmul.f32 %v919_v30, %v919_v30  ;;  %v920_v22 = vmul.f32 %v4428_v55, %v911_v46  ;;  %v1032_v26 = vmul.f32 %v4417_v34, %v1023_v35 }
 0x357   : > { %v1039_v32 = vmul.f32 1.442695, %v1030_v4  ;;  %3001 = vpow2.f32 %v1077_v47  ;;  %v1041_v13 = vmul.f32 1.442695, %v1031_v27  ;;  %v1871_v45 = vrot.slane %v1870_v6, 4 }
 0x358   : > { %v1025_v43 = vmul.f32 %v920_v22, %v920_v22  ;;  %v921_v44 = vmul.f32 %v4428_v55, %v912_v10  ;;  %v1033_v18 = vmul.f32 %v4417_v34, %v1024_v39  ;;  %3003 = vpow2.f32 %v1079_v59 }
 0x359   : > { %v1043_v56 = vmul.f32 1.442695, %v1032_v26  ;;  %v1878_v58 = vrot.slane %v1877_v57, 4  ;;  %v1067_v60 = vmul.f32 %v1059_v20, %v4417_v34  ;;  %3005 = vpow2.f32 %v1037_v16  ;;  %v2994_v11 = vpop.eup %2993 }
 0x35a   : > { %v1034_v51 = vmul.f32 %v4417_v34, %v1025_v43  ;;  %v1026_v0 = vmul.f32 %v921_v44, %v921_v44  ;;  %v1045_v62 = vmul.f32 1.442695, %v1033_v18  ;;  %v1846_v30 = vadd.f32 %v1845_v14, %v4373_v37 }
 0x35b   : > { %v1852_v46 = vrot.slane %v4398_v12, 2  ;;  %v1865_v5 = vadd.f32 %v1864_v25, %v4404_v29  ;;  %3007 = vpow2.f32 %v1039_v32  ;;  %v1886_v49 = vadd.f32 %v1885_v36, %v4447_v19  ;;  %v2996_v25 = vpop.eup %2995 }
 0x35c   : > { %3009 = vpow2.f32 %v1041_v13  ;;  %v1047_v35 = vmul.f32 1.442695, %v1034_v51  ;;  %v1035_v10 = vmul.f32 %v4417_v34, %v1026_v0  ;;  %v1893_v28 = vadd.f32 %v1892_v21, %v4451_v1  ;;  %v767_v51 = vpop.xlane.xlu1 %766 }
 0x35d   : > { %v1872_v39 = vadd.f32 %v1871_v45, %v1870_v6  ;;  %3011 = vpow2.f32 %v1043_v56  ;;  %v1839_v37 = vadd.f32 %v1838_v53, %v4394_v8  ;;  %v1859_v14 = vrot.slane %v4434_v24, 2  ;;  %v2998_v47 = vpop.eup %2997 }
 0x35e   : > { %v1879_v22 = vadd.f32 %v1878_v58, %v1877_v57  ;;  %v1081_v29 = vmul.f32 1.442695, %v1067_v60  ;;  %3013 = vpow2.f32 %v1045_v62  ;;  %v1866_v19 = vrot.slane %v1865_v5, 2 }
 0x35f   : > { %v1826_v61 = vrot.slane %v4420_v31, 1  ;;  %v1833_v52 = vrot.slane %v4406_v48, 1  ;;  %v1847_v4 = vrot.slane %v1846_v30, 1  ;;  %v1887_v1 = vrot.slane %v1886_v49, 2  ;;  %v3000_v53 = vpop.eup %2999 }
 0x360   : > { %3015 = vpow2.f32 %v1047_v35  ;;  %v1049_v27 = vmul.f32 1.442695, %v1035_v10  ;;  %v1853_v8 = vadd.f32 %v1852_v46, %v4398_v12  ;;  %v1894_v43 = vrot.slane %v1893_v28, 2 }
 0x361   : > { %v1873_v44 = vrot.slane %v1872_v39, 2  ;;  %v1840_v6 = vrot.slane %v1839_v37, 1  ;;  %v3002_v59 = vpop.eup %3001  ;;  %v1860_v26 = vadd.f32 %v1859_v14, %v4434_v24  ;;  %v1880_v20 = vrot.slane %v1879_v22, 2 }
 0x362   : > { %3017 = vpow2.f32 %v1081_v29  ;;  %v986_v16 = vrot.slane %v4390_v54, %v4321_v17  ;;  %v3004_v18 = vpop.eup %3003  ;;  %v4509_v36 = vadd.f32 %v1819_v42, %v4371_v33  ;;  %v4512_v12 = vadd.f32 %v1826_v61, %v4420_v31 }
 0x363   : > { %v4515_v57 = vadd.f32 %v1833_v52, %v4406_v48  ;;  %v1867_v32 = vadd.f32 %v1866_v19, %v1865_v5  ;;  %v3006_v13 = vpop.eup %3005  ;;  %v1888_v24 = vadd.f32 %v1887_v1, %v1886_v49  ;;  %3019 = vpow2.f32 %v1049_v27  ;;  %v3127_v27 = vld [vmem:[#allocation6] sm:$0xf] }
 0x364   : > { %v4517_v0 = vadd.f32 %v1847_v4, %v1846_v30  ;;  %v1854_v54 = vrot.slane %v1853_v8, 1  ;;  %v1874_v45 = vadd.f32 %v1873_v44, %v1872_v39  ;;  %v2858_v56 = vrot.slane %v2994_v11, 9 }
 0x365   : > { %v3008_v21 = vpop.eup %3007  ;;  %v4519_v33 = vadd.f32 %v1840_v6, %v1839_v37  ;;  %v1895_v42 = vadd.f32 %v1894_v43, %v1893_v28  ;;  %v2859_v58 = vrot.slane %v2996_v25, 9  ;;  %v994_v60 = vrot.slane %v986_v16, 7 }
 0x366   : > { %v3010_v31 = vpop.eup %3009  ;;  %v1861_v48 = vrot.slane %v1860_v26, 1  ;;  %v1881_v62 = vadd.f32 %v1880_v20, %v1879_v22  ;;  %v2860_v5 = vrot.slane %v2998_v47, 9  ;;  %v897_v49 = vrot.slane %v767_v51, %v4321_v17 }
 0x367   : > { %v3012_v46 = vpop.eup %3011  ;;  %v1117_v35 = vadd.f32 %v3006_v13, %v2858_v56  ;;  %v1868_v30 = vrot.slane %v1867_v32, 1  ;;  %v2861_v14 = vrot.slane %v3000_v53, 9  ;;  %v4523_v29 = vstv %s4500_s25 }
 0x368   : > { %v3014_v10 = vpop.eup %3013  ;;  %5139 = vst [vmem:[#allocation17_spill] sm:$0xff] %v4523_v29  ;;  %v1118_v39 = vadd.f32 %v3008_v21, %v2859_v58  ;;  %v1889_v11 = vrot.slane %v1888_v24, 1  ;;  %v2862_v37 = vrot.slane %v3002_v59, 9  ;;  %v1119_v19 = vadd.f32 %v3010_v31, %v2860_v5 }
 0x369   : > { %v1875_v28 = vrot.slane %v1874_v45, 1  ;;  %v1896_v61 = vrot.slane %v1895_v42, 1  ;;  %v1010_v52 = vsub.f32 %v3976_v38, %v994_v60  ;;  %v4526_v22 = vadd.f32 %v1854_v54, %v1853_v8 }
 0x36a   : > { %v3016_v25 = vpop.eup %3015  ;;  %v1120_v4 = vadd.f32 %v3012_v46, %v2861_v14  ;;  %v1882_v47 = vrot.slane %v1881_v62, 1  ;;  %v2863_v1 = vrot.slane %v3004_v18, 9  ;;  %v913_v43 = vsub.f32 %v3127_v27, %v897_v49 }
 0x36b   : > { %v4529_v53 = vmul.f32 %v4523_v29, %v1117_v35  ;;  %v1121_v44 = vadd.f32 %v3014_v10, %v2862_v37  ;;  %v4532_v59 = vmul.f32 %v4523_v29, %v1118_v39  ;;  %v4534_v20 = vadd.f32 %v1861_v48, %v1860_v26 }
 0x36c   : > { %v3018_v6 = vpop.eup %3017  ;;  %v4536_v16 = vadd.f32 %v1868_v30, %v1867_v32  ;;  %v4538_v38 = vadd.f32 %v1889_v11, %v1888_v24  ;;  %v4541_v13 = vmul.f32 %v4523_v29, %v1119_v19  ;;  %v4543_v18 = vadd.f32 %v1875_v28, %v1874_v45 }
 0x36d   : > { %v1122_v51 = vadd.f32 %v3016_v25, %v2863_v1  ;;  %v4545_v54 = vadd.f32 %v1896_v61, %v1895_v42  ;;  %v3020_v21 = vpop.eup %3019  ;;  %v4548_v56 = vmul.f32 %v4388_v23, %v1010_v52  ;;  %v4552_v32 = vmul.f32 %v4523_v29, %v1120_v4  ;;  %v4594_v1 = vld [vmem:[%s3586_s6 + $0x18] sm:$0xf] }
 0x36e   : > { %v4554_v24 = vadd.f32 %v1882_v47, %v1881_v62  ;;  %v2864_v31 = vrot.slane %v3018_v6, 9  ;;  %v4557_v58 = vmul.f32 %v4428_v55, %v913_v43  ;;  %v4562_v60 = vmul.f32 %v4523_v29, %v1121_v44 }
 0x36f   : > { %v4575_v49 = vmul.f32 %v4523_v29, %v1122_v51 }
 0x370   : > { %v1123_v35 = vadd.f32 %v3020_v21, %v2864_v31 }
 0x372   : > { %v4600_v44 = vmul.f32 %v4523_v29, %v1123_v35 }
 0x374   : > { %v1321_v8 = vpop.permute.xlu0 %1320 }
 0x375   : > { %v1356_v26 = vrot.slane %v1321_v8, %v4321_v17 }
 0x376   : > { %v1325_v45 = vpop.permute.xlu1 %1324 }
 0x377   : > { %v1414_v23 = vmul.f32 %v4326_v50, %v1356_v26  ;;  %v1363_v48 = vrot.slane %v1325_v45, %v4321_v17 }
 0x379   : > { %v1436_v50 = vrot.slane %v1414_v23, %v5138_v7  ;;  %v1415_v30 = vmul.f32 %v4337_v3, %v1363_v48  ;;  %v1649_v10 = vpop.permute.xlu0 %1648 }
 0x37a   : > { %v1702_v11 = vrot.slane %v1649_v10, %v4321_v17  ;;  %v1329_v37 = vpop.permute.xlu1 %1328 }
 0x37b   : > { %v1437_v3 = vcombine.high %v1436_v50, %v1436_v50  ;;  %v1510_v25 = vsel %vm368_vm0, %v1436_v50, 0.0  ;;  %v1444_v52 = vrot.slane %v1415_v30, %v5138_v7  ;;  %v1370_v4 = vrot.slane %v1329_v37, %v4321_v17 }
 0x37c   : > { %v1511_v47 = vrot.slane %v1510_v25, 4  ;;  %v1724_v27 = vmul.f32 %v4594_v1, %v1702_v11 }
 0x37d   : > { %v1517_v6 = vsel %vm376_vm1, %v1437_v3, 0.0  ;;  %v1445_v8 = vcombine.high %v1444_v52, %v1444_v52  ;;  %v1524_v51 = vsel %vm368_vm0, %v1444_v52, 0.0  ;;  %v1416_v21 = vmul.f32 %v4344_v9, %v1370_v4 }
 0x37e   : > { %v1512_v26 = vadd.f32 %v1511_v47, %v1510_v25  ;;  %v1518_v31 = vrot.slane %v1517_v6, 4  ;;  %v1525_v45 = vrot.slane %v1524_v51, 4  ;;  %v1788_v23 = vrot.slane %v1724_v27, %v5138_v7  ;;  %v1333_v48 = vpop.permute.xlu1 %1332 }
 0x37f   : > { %v1531_v50 = vsel %vm376_vm1, %v1445_v8, 0.0  ;;  %v1452_v30 = vrot.slane %v1416_v21, %v5138_v7  ;;  %v1377_v35 = vrot.slane %v1333_v48, %v4321_v17 }
 0x380   : > { %v1513_v11 = vrot.slane %v1512_v26, 2  ;;  %v1519_v37 = vadd.f32 %v1518_v31, %v1517_v6  ;;  %v1526_v3 = vadd.f32 %v1525_v45, %v1524_v51  ;;  %v1532_v52 = vrot.slane %v1531_v50, 4 }
 0x381   : > { %v1789_v9 = vcombine.high %v1788_v23, %v1788_v23  ;;  %v1898_v25 = vsel %vm368_vm0, %v1788_v23, 0.0  ;;  %v1453_v4 = vcombine.high %v1452_v30, %v1452_v30  ;;  %v1538_v47 = vsel %vm368_vm0, %v1452_v30, 0.0 }
 0x382   : > { %v1514_v27 = vadd.f32 %v1513_v11, %v1512_v26  ;;  %v1520_v61 = vrot.slane %v1519_v37, 2  ;;  %v1527_v8 = vrot.slane %v1526_v3, 2  ;;  %v1533_v43 = vadd.f32 %v1532_v52, %v1531_v50  ;;  %v1337_v21 = vpop.permute.xlu1 %1336 }
 0x383   : > { %v1899_v19 = vrot.slane %v1898_v25, 4  ;;  %v1905_v48 = vsel %vm376_vm1, %v1789_v9, 0.0  ;;  %v1539_v28 = vrot.slane %v1538_v47, 4  ;;  %v1545_v10 = vsel %vm376_vm1, %v1453_v4, 0.0 }
 0x384   : > { %v1515_v6 = vrot.slane %v1514_v27, 1  ;;  %v4615_v51 = vadd.f32 %v1527_v8, %v1526_v3  ;;  %v1534_v31 = vrot.slane %v1533_v43, 2  ;;  %v1906_v30 = vrot.slane %v1905_v48, 4 }
 0x385   : > { %v1900_v23 = vadd.f32 %v1899_v19, %v1898_v25  ;;  %v1540_v26 = vadd.f32 %v1539_v28, %v1538_v47  ;;  %v1546_v11 = vrot.slane %v1545_v10, 4  ;;  %v1521_v39 = vadd.f32 %v1520_v61, %v1519_v37 }
 0x386   : > { %v1417_v50 = vmul.f32 %v4356_v41, %v1377_v35  ;;  %v1384_v52 = vrot.slane %v1337_v21, %v4321_v17  ;;  %v1341_v9 = vpop.permute.xlu1 %1340  ;;  %v4624_v55 = vadd.f32 %v1534_v31, %v1533_v43  ;;  %v4631_v35 = vadd.f32 %v1906_v30, %v1905_v48 }
 0x387   : > { %v1901_v8 = vrot.slane %v1900_v23, 2  ;;  %v1541_v14 = vrot.slane %v1540_v26, 2  ;;  %v1547_v5 = vadd.f32 %v1546_v11, %v1545_v10  ;;  %v1391_v61 = vrot.slane %v1341_v9, %v4321_v17 }
 0x388   : > { %v1460_v19 = vrot.slane %v1417_v50, %v5138_v7  ;;  %v1418_v28 = vmul.f32 %v4437_v63, %v1384_v52  ;;  %v1516_v25 = vadd.f32 %v1515_v6, %v1514_v27 }
 0x389   : > { %v4629_v41 = vadd.f32 %v1901_v8, %v1900_v23  ;;  %v4633_v37 = vadd.f32 %v1541_v14, %v1540_v26  ;;  %v1419_v43 = vmul.f32 %v4384_v15, %v1391_v61  ;;  %v1548_v63 = vrot.slane %v1547_v5, 2 }
 0x38a   : > { %v1461_v47 = vcombine.high %v1460_v19, %v1460_v19  ;;  %v1552_v21 = vsel %vm368_vm0, %v1460_v19, 0.0  ;;  %v1468_v10 = vrot.slane %v1418_v28, %v5138_v7  ;;  %v1345_v31 = vpop.permute.xlu1 %1344  ;;  %v1522_v28 = vrot.slane %v1521_v39, 1 }
 0x38b   : > { %v1543_v11 = vrot.slane %v4633_v37, 1  ;;  %v1553_v50 = vrot.slane %v1552_v21, 4  ;;  %v1398_v23 = vrot.slane %v1345_v31, %v4321_v17  ;;  %v1476_v27 = vrot.slane %v1419_v43, %v5138_v7 }
 0x38c   : > { %v1559_v48 = vsel %vm376_vm1, %v1461_v47, 0.0  ;;  %v1469_v30 = vcombine.high %v1468_v10, %v1468_v10  ;;  %v1566_v14 = vsel %vm368_vm0, %v1468_v10, 0.0  ;;  %v1549_v42 = vadd.f32 %v1548_v63, %v1547_v5 }
 0x38d   : > { %v1554_v6 = vadd.f32 %v1553_v50, %v1552_v21  ;;  %v1560_v26 = vrot.slane %v1559_v48, 4  ;;  %v1567_v52 = vrot.slane %v1566_v14, 4  ;;  %v1420_v9 = vmul.f32 %v4594_v1, %v1398_v23 }
 0x38e   : > { %v1573_v15 = vsel %vm376_vm1, %v1469_v30, 0.0  ;;  %v1477_v8 = vcombine.high %v1476_v27, %v1476_v27  ;;  %v1580_v19 = vsel %vm368_vm0, %v1476_v27, 0.0  ;;  %v1523_v21 = vadd.f32 %v1522_v28, %v1521_v39 }
 0x38f   : > { %v1555_v61 = vrot.slane %v1554_v6, 2  ;;  %v1561_v31 = vadd.f32 %v1560_v26, %v1559_v48  ;;  %v1568_v4 = vadd.f32 %v1567_v52, %v1566_v14  ;;  %v1574_v47 = vrot.slane %v1573_v15, 4 }
 0x390   : > { %v1581_v45 = vrot.slane %v1580_v19, 4  ;;  %v1587_v10 = vsel %vm376_vm1, %v1477_v8, 0.0  ;;  %v1484_v43 = vrot.slane %v1420_v9, %v5138_v7  ;;  %v5141_v5 = vrot.slane %v4529_v53, %v3979_v40 }
 0x391   : > { %v1556_v50 = vadd.f32 %v1555_v61, %v1554_v6  ;;  %v1562_v62 = vrot.slane %v1561_v31, 2  ;;  %v1569_v3 = vrot.slane %v1568_v4, 2  ;;  %v1575_v1 = vadd.f32 %v1574_v47, %v1573_v15 }
 0x392   : > { %v1582_v23 = vadd.f32 %v1581_v45, %v1580_v19  ;;  %v1588_v30 = vrot.slane %v1587_v10, 4  ;;  %v1485_v46 = vcombine.high %v1484_v43, %v1484_v43  ;;  %v1594_v27 = vsel %vm368_vm0, %v1484_v43, 0.0 }
 0x393   : > { %v1557_v29 = vrot.slane %v1556_v50, 1  ;;  %v1570_v48 = vadd.f32 %v1569_v3, %v1568_v4  ;;  %v1576_v14 = vrot.slane %v1575_v1, 2  ;;  %v1595_v17 = vrot.slane %v1594_v27, 4 }
 0x394   : > { %v1583_v26 = vrot.slane %v1582_v23, 2  ;;  %v1589_v52 = vadd.f32 %v1588_v30, %v1587_v10  ;;  %v1601_v8 = vsel %vm376_vm1, %v1485_v46, 0.0  ;;  %v1563_v9 = vadd.f32 %v1562_v62, %v1561_v31 }
 0x395   : > { %v1571_v39 = vrot.slane %v1570_v48, 1  ;;  %v1602_v6 = vrot.slane %v1601_v8, 4  ;;  %v5140_v15 = vrot.slane %v4529_v53, %v3921_v2  ;;  %v1596_v61 = vadd.f32 %v1595_v17, %v1594_v27 }
 0x396   : > { %v1584_v19 = vadd.f32 %v1583_v26, %v1582_v23  ;;  %v1590_v28 = vrot.slane %v1589_v52, 2  ;;  %v2015_v4 = vmul.f32 %v5141_v5, %v1523_v21  ;;  %v5142_v46 = vrot.slane %v4615_v51, 1 }
 0x397   : > { %v2014_v45 = vmul.f32 %v5140_v15, %v1516_v25  ;;  %v1603_v3 = vadd.f32 %v1602_v6, %v1601_v8  ;;  %v1536_v31 = vrot.slane %v4624_v55, 1  ;;  %v1577_v47 = vadd.f32 %v1576_v14, %v1575_v1 }
 0x398   : > { %v1530_v62 = vadd.f32 %v5142_v46, %v4615_v51  ;;  %v1585_v10 = vrot.slane %v1584_v19, 1  ;;  %v1597_v25 = vrot.slane %v1596_v61, 2  ;;  %v4664_v43 = vadd.f32 %v2015_v4, %v4512_v12 }
 0x399   : > { %v4657_v63 = vadd.f32 %v2014_v45, %v4509_v36  ;;  %v1591_v17 = vadd.f32 %v1590_v28, %v1589_v52  ;;  %v1537_v21 = vadd.f32 %v1536_v31, %v4624_v55  ;;  %v5143_v36 = vrot.slane %v4532_v59, %v3921_v2 }
 0x39a   : > { %v1598_v30 = vadd.f32 %v1597_v25, %v1596_v61  ;;  %v2047_v51 = vsel %vm728_vm9, %v4664_v43, 0.0  ;;  %v1544_v1 = vadd.f32 %v1543_v11, %v4633_v37  ;;  %v1550_v27 = vrot.slane %v1549_v42, 1 }
 0x39b   : > { %v2046_v53 = vsel %vm726_vm8, %v4657_v63, 0.0  ;;  %v2016_v23 = vmul.f32 %v5143_v36, %v1530_v62  ;;  %v1604_v14 = vrot.slane %v1603_v3, 2  ;;  %v5144_v26 = vrot.slane %v4532_v59, %v3979_v40 }
 0x39c   : > { %v2048_v12 = vadd.f32 %v2047_v51, %v2046_v53  ;;  %v1599_v55 = vrot.slane %v1598_v30, 1  ;;  %v1551_v6 = vadd.f32 %v1550_v27, %v1549_v42  ;;  %v5145_v15 = vrot.slane %v4541_v13, %v3921_v2 }
 0x39d   : > { %v2017_v52 = vmul.f32 %v5144_v26, %v1537_v21  ;;  %v4679_v8 = vadd.f32 %v2016_v23, %v4515_v57  ;;  %v1558_v28 = vadd.f32 %v1557_v29, %v1556_v50  ;;  %v1564_v61 = vrot.slane %v1563_v9, 1 }
 0x39e   : > { %v2018_v45 = vmul.f32 %v5145_v15, %v1544_v1  ;;  %2049 = vadd.xlane.f32.xlu0 %v2048_v12  ;;  %v1572_v59 = vadd.f32 %v1571_v39, %v1570_v48  ;;  %v5146_v57 = vrot.slane %v4541_v13, %v3979_v40  ;;  %v5147_v4 = vrot.slane %v4552_v32, %v3921_v2 }
 0x39f   : > { %v4685_v37 = vadd.f32 %v2017_v52, %v4519_v33  ;;  %v2051_v11 = vsel %vm726_vm8, %v4679_v8, 0.0  ;;  %v1578_v50 = vrot.slane %v1577_v47, 1  ;;  %v1565_v46 = vadd.f32 %v1564_v61, %v1563_v9 }
 0x3a0   : > { %v2019_v5 = vmul.f32 %v5146_v57, %v1551_v6  ;;  %v4693_v42 = vadd.f32 %v2018_v45, %v4517_v0  ;;  %v2020_v29 = vmul.f32 %v5147_v4, %v1558_v28  ;;  %v5148_v62 = vrot.slane %v4562_v60, %v3921_v2 }
 0x3a1   : > { %v2052_v33 = vsel %vm728_vm9, %v4685_v37, 0.0  ;;  %v1586_v39 = vadd.f32 %v1585_v10, %v1584_v19  ;;  %v1605_v31 = vadd.f32 %v1604_v14, %v1603_v3  ;;  %v1908_v53 = vrot.slane %v4631_v35, 2 }
 0x3a2   : > { %v2022_v48 = vmul.f32 %v5148_v62, %v1572_v59  ;;  %v2053_v13 = vadd.f32 %v2052_v33, %v2051_v11  ;;  %v4704_v25 = vadd.f32 %v2019_v5, %v4526_v22  ;;  %v4707_v0 = vadd.f32 %v2020_v29, %v4534_v20 }
 0x3a3   : > { %v5149_v21 = vrot.slane %v4552_v32, %v3979_v40  ;;  %v1579_v9 = vadd.f32 %v1578_v50, %v1577_v47  ;;  %v1592_v23 = vrot.slane %v1591_v17, 1  ;;  %v2056_v19 = vsel %vm726_vm8, %v4693_v42, 0.0 }
 0x3a4   : > { %2054 = vadd.xlane.f32.xlu1 %v2053_v13  ;;  %v2057_v3 = vsel %vm728_vm9, %v4704_v25, 0.0  ;;  %v5150_v22 = vrot.slane %v4575_v49, %v3921_v2  ;;  %v1600_v10 = vadd.f32 %v1599_v55, %v1598_v30  ;;  %v5151_v32 = vrot.slane %v4562_v60, %v3979_v40 }
 0x3a5   : > { %v2021_v36 = vmul.f32 %v5149_v21, %v1565_v46  ;;  %v2058_v51 = vadd.f32 %v2057_v3, %v2056_v19  ;;  %v4727_v27 = vadd.f32 %v2022_v48, %v4543_v18  ;;  %v2061_v14 = vsel %vm726_vm8, %v4707_v0, 0.0 }
 0x3a6   : > { %v2024_v20 = vmul.f32 %v5150_v22, %v1586_v39  ;;  %v2023_v47 = vmul.f32 %v5151_v32, %v1579_v9  ;;  %v1593_v12 = vadd.f32 %v1592_v23, %v1591_v17  ;;  %v1606_v26 = vrot.slane %v1605_v31, 1 }
 0x3a7   : > { %v4721_v1 = vadd.f32 %v2021_v36, %v4536_v16  ;;  %v1903_v52 = vrot.slane %v4629_v41, 1  ;;  %2059 = vadd.xlane.f32.xlu0 %v2058_v51  ;;  %v1909_v60 = vadd.f32 %v1908_v53, %v4631_v35  ;;  %v5152_v18 = vrot.slane %v4600_v44, %v3921_v2 }
 0x3a8   : > { %v4735_v16 = vadd.f32 %v2023_v47, %v4554_v24  ;;  %v5153_v17 = vrot.slane %v4575_v49, %v3979_v40  ;;  %v4745_v45 = vadd.f32 %v2024_v20, %v4538_v38  ;;  %v1607_v28 = vadd.f32 %v1606_v26, %v1605_v31 }
 0x3a9   : > { %v2062_v30 = vsel %vm728_vm9, %v4721_v1, 0.0  ;;  %v2026_v55 = vmul.f32 %v5152_v18, %v1600_v10  ;;  %v2066_v11 = vsel %vm726_vm8, %v4727_v27, 0.0  ;;  %v1904_v35 = vadd.f32 %v1903_v52, %v4629_v41 }
 0x3aa   : > { %v2063_v6 = vadd.f32 %v2062_v30, %v2061_v14  ;;  %v2025_v15 = vmul.f32 %v5153_v17, %v1593_v12  ;;  %v2067_v24 = vsel %vm728_vm9, %v4735_v16, 0.0  ;;  %v1910_v61 = vrot.slane %v1909_v60, 1  ;;  %v5155_v14 = vld [vmem:[#allocation18_spill] sm:$0xff]  ;;  %v4800_v30 = vld [vmem:[%s3586_s6 + $0x1c] sm:$0xf] }
 0x3ab   : > { %v2068_v59 = vadd.f32 %v2067_v24, %v2066_v11  ;;  %v5154_v49 = vrot.slane %v4600_v44, %v3979_v40  ;;  %v1060_v38 = vmul.f32 %v4548_v56, %v4548_v56  ;;  %v4760_v29 = vadd.f32 %v2026_v55, %v1904_v35 }
 0x3ac   : > { %v4753_v57 = vadd.f32 %v2025_v15, %v4545_v54  ;;  %2064 = vadd.xlane.f32.xlu0 %v2063_v6  ;;  %v1911_v4 = vadd.f32 %v1910_v61, %v1909_v60  ;;  %v2071_v41 = vsel %vm726_vm8, %v4745_v45, 0.0  ;;  %v1027_v54 = vmul.f32 %v4557_v58, %v4557_v58 }
 0x3ad   : > { %v2027_v5 = vmul.f32 %v5154_v49, %v1607_v28  ;;  %2069 = vadd.xlane.f32.xlu1 %v2068_v59  ;;  %v2095_v56 = vmul.f32 %v4664_v43, %v4664_v43  ;;  %v1068_v46 = vmul.f32 %v1060_v38, %v4417_v34  ;;  %v2076_v62 = vsel %vm726_vm8, %v4760_v29, 0.0 }
 0x3ae   : > { %v2072_v50 = vsel %vm728_vm9, %v4753_v57, 0.0  ;;  %v2094_v39 = vmul.f32 %v4657_v63, %v4657_v63  ;;  %v1036_v58 = vmul.f32 %v4417_v34, %v1027_v54  ;;  %v2099_v53 = vmul.f32 %v4704_v25, %v4704_v25 }
 0x3af   : > { %v2073_v33 = vadd.f32 %v2072_v50, %v2071_v41  ;;  %v4768_v44 = vadd.f32 %v2027_v5, %v1911_v4  ;;  %v2111_v13 = vsel %vm728_vm9, %v2095_v56, 0.0  ;;  %v1083_v21 = vmul.f32 1.442695, %v1068_v46 }
 0x3b0   : > { %v2110_v36 = vsel %vm726_vm8, %v2094_v39, 0.0  ;;  %v2098_v9 = vmul.f32 %v4693_v42, %v4693_v42  ;;  %v1051_v19 = vmul.f32 1.442695, %v1036_v58  ;;  %v2121_v3 = vsel %vm728_vm9, %v2099_v53, 0.0 }
 0x3b1   : > { %2074 = vadd.xlane.f32.xlu0 %v2073_v33  ;;  %v2077_v48 = vsel %vm728_vm9, %v4768_v44, 0.0  ;;  %v2112_v23 = vadd.f32 %v2111_v13, %v2110_v36  ;;  %v2103_v34 = vmul.f32 %v4735_v16, %v4735_v16  ;;  %3021 = vpow2.f32 %v1083_v21 }
 0x3b2   : > { %v2078_v31 = vadd.f32 %v2077_v48, %v2076_v62  ;;  %v2120_v22 = vsel %vm726_vm8, %v2098_v9, 0.0  ;;  %v2102_v20 = vmul.f32 %v4727_v27, %v4727_v27  ;;  %3023 = vpow2.f32 %v1051_v19 }
 0x3b3   : > { %v2122_v10 = vadd.f32 %v2121_v3, %v2120_v22  ;;  %v2131_v32 = vsel %vm728_vm9, %v2103_v34, 0.0  ;;  %v2107_v47 = vmul.f32 %v4768_v44, %v4768_v44  ;;  %v2106_v52 = vmul.f32 %v4760_v29, %v4760_v29  ;;  %v5156_v3 = vld [vmem:[#allocation17_spill] sm:$0xff] }
 0x3b4   : > { %2079 = vadd.xlane.f32.xlu1 %v2078_v31  ;;  %v2130_v26 = vsel %vm726_vm8, %v2102_v20, 0.0 }
 0x3b5   : > { %v2132_v18 = vadd.f32 %v2131_v32, %v2130_v26  ;;  %v2141_v55 = vsel %vm728_vm9, %v2107_v47, 0.0  ;;  %v2140_v15 = vsel %vm726_vm8, %v2106_v52, 0.0 }
 0x3b6   : > { %v2142_v35 = vadd.f32 %v2141_v55, %v2140_v15 }
 0x3b7   : > { %v1349_v51 = vpop.permute.xlu1 %1348 }
 0x3b8   : > { %2113 = vadd.xlane.f32.xlu1 %v2112_v23  ;;  %v1405_v12 = vrot.slane %v1349_v51, %v5155_v14 }
 0x3ba   : > { %v1421_v60 = vmul.f32 %v4800_v30, %v1405_v12 }
 0x3bb   : > { %v3022_v61 = vpop.eup %3021 }
 0x3bc   : > { %2123 = vadd.xlane.f32.xlu1 %v2122_v10  ;;  %v1492_v6 = vrot.slane %v1421_v60, %v5138_v7  ;;  %v1653_v17 = vpop.permute.xlu1 %1652  ;;  %v3024_v38 = vpop.eup %3023  ;;  %v2865_v54 = vrot.slane %v3022_v61, 9 }
 0x3bd   : > { %v1709_v28 = vrot.slane %v1653_v17, %v5155_v14 }
 0x3be   : > { %v1493_v11 = vcombine.high %v1492_v6, %v1492_v6  ;;  %v1608_v24 = vsel %vm368_vm0, %v1492_v6, 0.0  ;;  %v1124_v39 = vadd.f32 %v3024_v38, %v2865_v54  ;;  %v2104_v54 = vmul.f32 %v4745_v45, %v4745_v45 }
 0x3bf   : > { %v1609_v59 = vrot.slane %v1608_v24, 4  ;;  %v1725_v49 = vmul.f32 %v4800_v30, %v1709_v28  ;;  %v2097_v28 = vmul.f32 %v4685_v37, %v4685_v37 }
 0x3c0   : > { %2133 = vadd.xlane.f32.xlu1 %v2132_v18  ;;  %v1615_v5 = vsel %vm376_vm1, %v1493_v11, 0.0  ;;  %v1133_v34 = vmul.f32 %v5156_v3, %v1124_v39  ;;  %v4862_v3 = vld [vmem:[#allocation7 + $0x2] sm:$0x1] }
 0x3c1   : > { %v1610_v4 = vadd.f32 %v1609_v59, %v1608_v24  ;;  %v1616_v41 = vrot.slane %v1615_v5, 4  ;;  %v1796_v50 = vrot.slane %v1725_v49, %v5138_v7  ;;  %v2116_v61 = vsel %vm728_vm9, %v2097_v28, 0.0 }
 0x3c2   : > { %v1993_v12 = vrot.slane %v1133_v34, %v3921_v2  ;;  %v1997_v60 = vrot.slane %v1133_v34, %v3979_v40  ;;  %v2101_v59 = vmul.f32 %v4721_v1, %v4721_v1  ;;  %v4865_v34 = vld [vmem:[#allocation7 + $0x5] sm:$0x1] }
 0x3c3   : > { %v1611_v33 = vrot.slane %v1610_v4, 2  ;;  %v1617_v56 = vadd.f32 %v1616_v41, %v1615_v5  ;;  %v1797_v46 = vcombine.high %v1796_v50, %v1796_v50  ;;  %v1912_v62 = vsel %vm368_vm0, %v1796_v50, 0.0 }
 0x3c4   : > { %2143 = vadd.xlane.f32.xlu1 %v2142_v35  ;;  %v1913_v48 = vrot.slane %v1912_v62, 4  ;;  %v2096_v35 = vmul.f32 %v4679_v8, %v4679_v8  ;;  %v2100_v5 = vmul.f32 %v4707_v0, %v4707_v0  ;;  %v2105_v41 = vmul.f32 %v4753_v57, %v4753_v57 }
 0x3c5   : > { %v1612_v31 = vadd.f32 %v1611_v33, %v1610_v4  ;;  %v1618_v58 = vrot.slane %v1617_v56, 2  ;;  %v1919_v13 = vsel %vm376_vm1, %v1797_v46, 0.0  ;;  %v2126_v4 = vsel %vm728_vm9, %v2101_v59, 0.0 }
 0x3c6   : > { %v1914_v53 = vadd.f32 %v1913_v48, %v1912_v62  ;;  %v1920_v21 = vrot.slane %v1919_v13, 4  ;;  %v2115_v49 = vsel %vm726_vm8, %v2096_v35, 0.0  ;;  %v2125_v50 = vsel %vm726_vm8, %v2100_v5, 0.0 }
 0x3c7   : > { %v1613_v36 = vrot.slane %v1612_v31, 1  ;;  %v1619_v9 = vadd.f32 %v1618_v58, %v1617_v56  ;;  %v2117_v38 = vadd.f32 %v2116_v61, %v2115_v49  ;;  %v2127_v33 = vadd.f32 %v2126_v4, %v2125_v50 }
 0x3c8   : > { %v1915_v23 = vrot.slane %v1914_v53, 2  ;;  %v1921_v19 = vadd.f32 %v1920_v21, %v1919_v13  ;;  %v2136_v56 = vsel %vm728_vm9, %v2105_v41, 0.0  ;;  %v2135_v62 = vsel %vm726_vm8, %v2104_v54, 0.0 }
 0x3c9   : > { %v1620_v22 = vrot.slane %v1619_v9, 1  ;;  %v1614_v51 = vadd.f32 %v1613_v36, %v1612_v31  ;;  %v2137_v39 = vadd.f32 %v2136_v56, %v2135_v62  ;;  %v3352_v58 = vmov 1   ;;  %v4853_v36 = vld [vmem:[#allocation7 + $0x1] sm:$0x1] }
 0x3ca   : > { %v1916_v20 = vadd.f32 %v1915_v23, %v1914_v53  ;;  %v1922_v10 = vrot.slane %v1921_v19, 2  ;;  %2987 = vset.pattern.permute.xlu1 %v3352_v58  ;;  %v4849_v53 = vld [vmem:[#allocation7] sm:$0x1]  ;;  %2988 = vset.pattern.permute.xlu0 %v3352_v58  ;;  %v4859_v23 = vld [vmem:[#allocation7 + $0x4] sm:$0x1] }
 0x3cb   : > { %v1621_v32 = vadd.f32 %v1620_v22, %v1619_v9  ;;  %v2028_v18 = vmul.f32 %v1993_v12, %v1614_v51  ;;  %v4856_v9 = vld [vmem:[#allocation7 + $0x3] sm:$0x1] }
 0x3cc   : > { %v1917_v47 = vrot.slane %v1916_v20, 1  ;;  %v1923_v14 = vadd.f32 %v1922_v10, %v1921_v19  ;;  %v3353_v19 = vmov 0  }
 0x3cd   : > { %v2029_v6 = vmul.f32 %v1997_v60, %v1621_v32 }
 0x3ce   : > { %v1918_v26 = vadd.f32 %v1917_v47, %v1916_v20  ;;  %v1924_v52 = vrot.slane %v1923_v14, 1 }
 0x3d0   : > { %v1925_v55 = vadd.f32 %v1924_v52, %v1923_v14  ;;  %v4816_v17 = vadd.f32 %v2028_v18, %v1918_v26 }
 0x3d2   : > { %v4818_v15 = vadd.f32 %v2029_v6, %v1925_v55  ;;  %v2081_v11 = vsel %vm726_vm8, %v4816_v17, 0.0  ;;  %v2108_v48 = vmul.f32 %v4816_v17, %v4816_v17 }
 0x3d4   : > { %v2082_v24 = vsel %vm728_vm9, %v4818_v15, 0.0  ;;  %v2109_v46 = vmul.f32 %v4818_v15, %v4818_v15  ;;  %v2145_v13 = vsel %vm726_vm8, %v2108_v48, 0.0 }
 0x3d5   : > { %v2083_v40 = vadd.f32 %v2082_v24, %v2081_v11  ;;  %2375 = vperm.xlu1 %2987, %v4849_v53  }
 0x3d6   : > { %v2146_v31 = vsel %vm728_vm9, %v2109_v46, 0.0 }
 0x3d7   : > { %2084 = vadd.xlane.f32.xlu0 %v2083_v40  ;;  %v2147_v21 = vadd.f32 %v2146_v31, %v2145_v13 }
 0x3d9   : > { %2383 = vperm.xlu1 %2987, %v4853_v36  }
 0x3db   : > { %2118 = vadd.xlane.f32.xlu0 %v2117_v38 }
 0x3dd   : > { %2399 = vperm.xlu1 %2987, %v4856_v9  }
 0x3df   : > { %2128 = vadd.xlane.f32.xlu0 %v2127_v33 }
 0x3e1   : > { %2407 = vperm.xlu1 %2987, %v4859_v23  }
 0x3e3   : > { %2138 = vadd.xlane.f32.xlu0 %v2137_v39 }
 0x3e5   : > { %2989 = vset.pattern.permute.xlu1 %v3353_v19 }
 0x3e7   : > { %2148 = vadd.xlane.f32.xlu0 %v2147_v21 }
 0x3fd   : > { %2391 = vperm.xlu0 %2988, %v4862_v3  }
 0x401   : > { %2415 = vperm.xlu0 %2988, %v4865_v34  }
 0x405   : > { %2990 = vset.pattern.permute.xlu0 %v3353_v19 }
 0x42b   : > { %v2050_v22 = vpop.xlane.xlu0 %2049 }
 0x42c   : > { %v4868_v10 = vmul.f32 0.0051020407, %v2050_v22 }
 0x42e   : > { %v2150_v14 = vmul.f32 196.0, %v4868_v10 }
 0x430   : > { %v2158_v26 = vmul.f32 %v2150_v14, %v4868_v10 }
 0x431   : > { %v2055_v20 = vpop.xlane.xlu1 %2054 }
 0x432   : > { %v4882_v19 = vmul.f32 0.0051020407, %v2055_v20 }
 0x434   : > { %v2060_v51 = vpop.xlane.xlu0 %2059 }
 0x435   : > { %v4870_v47 = vmul.f32 0.0051020407, %v2060_v51 }
 0x437   : > { %v2152_v52 = vmul.f32 196.0, %v4870_v47 }
 0x439   : > { %v2160_v6 = vmul.f32 %v2152_v52, %v4870_v47  ;;  %v2065_v48 = vpop.xlane.xlu0 %2064 }
 0x43a   : > { %v2070_v32 = vpop.xlane.xlu1 %2069  ;;  %v4885_v14 = vmul.f32 0.0051020407, %v2065_v48 }
 0x43b   : > { %v4876_v5 = vmul.f32 0.0051020407, %v2070_v32 }
 0x43c   : > { %v2153_v20 = vmul.f32 196.0, %v4885_v14 }
 0x43d   : > { %v2154_v56 = vmul.f32 196.0, %v4876_v5 }
 0x43e   : > { %v2075_v51 = vpop.xlane.xlu0 %2074 }
 0x43f   : > { %v2162_v21 = vmul.f32 %v2154_v56, %v4876_v5 }
 0x441   : > { %v2080_v12 = vpop.xlane.xlu1 %2079 }
 0x442   : > { %v4879_v39 = vmul.f32 0.0051020407, %v2080_v12 }
 0x444   : > { %v2156_v32 = vmul.f32 196.0, %v4879_v39 }
 0x445   : > { %v2114_v60 = vpop.xlane.xlu1 %2113 }
 0x446   : > { %v2166_v18 = vsub.f32 %v2114_v60, %v2158_v26  ;;  %v2164_v12 = vmul.f32 %v2156_v32, %v4879_v39 }
 0x448   : > { %v2174_v55 = vmax.f32 %v2166_v18, 0.0  ;;  %v2151_v18 = vmul.f32 196.0, %v4882_v19 }
 0x449   : > { %v2124_v28 = vpop.xlane.xlu1 %2123 }
 0x44a   : > { %v2182_v11 = vmul.f32 0.0051282053, %v2174_v55  ;;  %v2168_v24 = vsub.f32 %v2124_v28, %v2160_v6 }
 0x44c   : > { %3025 = vrsqrt.f32 %v2182_v11  ;;  %v2176_v35 = vmax.f32 %v2168_v24, 0.0  ;;  %vm2192_vm1 = vcmp.eq.f32.partialorder %v2182_v11, inf  ;;  %v2195_v49 = vand.u32 2147483648, %v2182_v11 }
 0x44d   : > { %vm2194_vm8 = vcmp.eq.f32.partialorder %v2182_v11, 0.0  ;;  %v2134_v31 = vpop.xlane.xlu1 %2133 }
 0x44e   : > { %v2184_v40 = vmul.f32 0.0051282053, %v2176_v35  ;;  %v2170_v22 = vsub.f32 %v2134_v31, %v2162_v21  ;;  %v2159_v35 = vmul.f32 %v2151_v18, %v4882_v19 }
 0x450   : > { %3027 = vrsqrt.f32 %v2184_v40  ;;  %vm2206_vm9 = vcmp.eq.f32.partialorder %v2184_v40, inf  ;;  %v2209_v33 = vand.u32 2147483648, %v2184_v40  ;;  %vm2208_vm2 = vcmp.eq.f32.partialorder %v2184_v40, 0.0 }
 0x451   : > { %v2178_v52 = vmax.f32 %v2170_v22, 0.0  ;;  %v2144_v60 = vpop.xlane.xlu1 %2143 }
 0x452   : > { %v2172_v28 = vsub.f32 %v2144_v60, %v2164_v12 }
 0x453   : > { %v2186_v24 = vmul.f32 0.0051282053, %v2178_v52 }
 0x455   : > { %vm2220_vm14 = vcmp.eq.f32.partialorder %v2186_v24, inf  ;;  %vm2222_vm4 = vcmp.eq.f32.partialorder %v2186_v24, 0.0 }
 0x456   : > { %v3026_v61 = vpop.eup %3025 }
 0x457   : > { %v2191_v59 = vmul.f32 %v3026_v61, %v2182_v11 }
 0x459   : > { %v2193_v38 = vsel %vm2192_vm1, %v2182_v11, %v2191_v59  ;;  %v4891_v11 = vmul.f32 0.0051020407, %v2075_v51 }
 0x45a   : > { %v2196_v4 = vsel %vm2194_vm8, %v2195_v49, %v2193_v38  ;;  %v3028_v41 = vpop.eup %3027  ;;  %v2180_v38 = vmax.f32 %v2172_v28, 0.0  ;;  %vm2710_vm8 = vcmask 551938  }
 0x45b   : > { %v2246_v50 = vadd.f32 1e-05, %v2196_v4  ;;  %v2205_v54 = vmul.f32 %v3028_v41, %v2184_v40  ;;  %v2161_v4 = vmul.f32 %v2153_v20, %v4885_v14 }
 0x45d   : > { %3029 = vrcp.f32 %v2246_v50  ;;  %v2207_v46 = vsel %vm2206_vm9, %v2184_v40, %v2205_v54  ;;  %v2155_v50 = vmul.f32 196.0, %v4891_v11  ;;  %vm4937_vm9 = vmor %vm2710_vm8, %vm368_vm0 }
 0x45e   : > { %v2210_v62 = vsel %vm2208_vm2, %v2209_v33, %v2207_v46  ;;  %v4899_v46 = vmul.f32 0.0051282053, %v2180_v38 }
 0x45f   : > { %v2248_v13 = vadd.f32 1e-05, %v2210_v62 }
 0x460   : > { %vm2234_vm7 = vcmp.eq.f32.partialorder %v4899_v46, inf  ;;  %vm2236_vm12 = vcmp.eq.f32.partialorder %v4899_v46, 0.0 }
 0x461   : > { %3031 = vrcp.f32 %v2248_v13 }
 0x462   : > { %3033 = vrsqrt.f32 %v2186_v24 }
 0x464   : > { %v2085_v6 = vpop.xlane.xlu0 %2084 }
 0x467   : > { %v3030_v26 = vpop.eup %3029 }
 0x468   : > { %v2271_v55 = vmul.f32 %v4849_v53, %v3030_v26  ;;  %v2119_v61 = vpop.xlane.xlu0 %2118  ;;  %v4896_v53 = vmul.f32 0.0051020407, %v2085_v6 }
 0x469   : > { %v2167_v49 = vsub.f32 %v2119_v61, %v2159_v35 }
 0x46a   : > { %2288 = vperm.xlu1 %2989, %v2271_v55   ;;  %v2157_v48 = vmul.f32 196.0, %v4896_v53 }
 0x46b   : > { %v3032_v40 = vpop.eup %3031  ;;  %v2175_v41 = vmax.f32 %v2167_v49, 0.0  ;;  %v2223_v49 = vand.u32 2147483648, %v2186_v24 }
 0x46c   : > { %v2275_v59 = vmul.f32 %v4862_v3, %v3032_v40  ;;  %v2129_v54 = vpop.xlane.xlu0 %2128  ;;  %v2163_v3 = vmul.f32 %v2155_v50, %v4891_v11  ;;  %v2165_v22 = vmul.f32 %v2157_v48, %v4896_v53  ;;  %v3034_v26 = vpop.eup %3033 }
 0x46d   : > { %v2183_v33 = vmul.f32 0.0051282053, %v2175_v41  ;;  %v2169_v56 = vsub.f32 %v2129_v54, %v2161_v4  ;;  %v2219_v12 = vmul.f32 %v3034_v26, %v2186_v24 }
 0x46e   : > { %2306 = vperm.xlu1 %2989, %v2275_v59  }
 0x46f   : > { %3035 = vrsqrt.f32 %v2183_v33  ;;  %v2177_v62 = vmax.f32 %v2169_v56, 0.0  ;;  %vm2199_vm15 = vcmp.eq.f32.partialorder %v2183_v33, inf  ;;  %v2202_v20 = vand.u32 2147483648, %v2183_v33 }
 0x470   : > { %v2139_v31 = vpop.xlane.xlu0 %2138  ;;  %3037 = vrsqrt.f32 %v4899_v46  ;;  %v2221_v40 = vsel %vm2220_vm14, %v2186_v24, %v2219_v12  ;;  %vm2201_vm3 = vcmp.eq.f32.partialorder %v2183_v33, 0.0 }
 0x471   : > { %v2185_v13 = vmul.f32 0.0051282053, %v2177_v62  ;;  %v2171_v21 = vsub.f32 %v2139_v31, %v2163_v3  ;;  %v2224_v54 = vsel %vm2222_vm4, %v2223_v49, %v2221_v40 }
 0x473   : > { %3039 = vrsqrt.f32 %v2185_v13  ;;  %v2179_v51 = vmax.f32 %v2171_v21, 0.0  ;;  %vm2213_vm5 = vcmp.eq.f32.partialorder %v2185_v13, inf  ;;  %v2216_v50 = vand.u32 2147483648, %v2185_v13 }
 0x474   : > { %v2149_v32 = vpop.xlane.xlu0 %2148  ;;  %vm2215_vm6 = vcmp.eq.f32.partialorder %v2185_v13, 0.0  ;;  %v2250_v21 = vadd.f32 1e-05, %v2224_v54 }
 0x475   : > { %v2173_v52 = vsub.f32 %v2149_v32, %v2165_v22  ;;  %v2187_v60 = vmul.f32 0.0051282053, %v2179_v51  ;;  %v2237_v32 = vand.u32 2147483648, %v4899_v46 }
 0x477   : > { %v2181_v18 = vmax.f32 %v2173_v52, 0.0  ;;  %3041 = vrsqrt.f32 %v2187_v60  ;;  %vm2227_vm10 = vcmp.eq.f32.partialorder %v2187_v60, inf  ;;  %v2230_v24 = vand.u32 2147483648, %v2187_v60 }
 0x478   : > { %vm2229_vm11 = vcmp.eq.f32.partialorder %v2187_v60, 0.0 }
 0x479   : > { %v3036_v55 = vpop.eup %3035  ;;  %v2189_v6 = vmul.f32 0.0051282053, %v2181_v18 }
 0x47a   : > { %v2198_v28 = vmul.f32 %v3036_v55, %v2183_v33  ;;  %v3038_v35 = vpop.eup %3037 }
 0x47b   : > { %3043 = vrsqrt.f32 %v2189_v6  ;;  %v2233_v56 = vmul.f32 %v3038_v35, %v4899_v46  ;;  %vm2241_vm13 = vcmp.eq.f32.partialorder %v2189_v6, inf  ;;  %vm2243_vm1 = vcmp.eq.f32.partialorder %v2189_v6, 0.0 }
 0x47c   : > { %v2200_v61 = vsel %vm2199_vm15, %v2183_v33, %v2198_v28  ;;  %v2244_v28 = vand.u32 2147483648, %v2189_v6 }
 0x47d   : > { %v3040_v59 = vpop.eup %3039  ;;  %v2203_v38 = vsel %vm2201_vm3, %v2202_v20, %v2200_v61  ;;  %v2235_v22 = vsel %vm2234_vm7, %v4899_v46, %v2233_v56 }
 0x47e   : > { %v2212_v4 = vmul.f32 %v3040_v59, %v2185_v13  ;;  %v2247_v41 = vadd.f32 1e-05, %v2203_v38  ;;  %v2238_v12 = vsel %vm2236_vm12, %v2237_v32, %v2235_v22  ;;  %v3136_v38 = vld [vmem:[#allocation7 + $0x7] sm:$0x1] }
 0x47f   : > { %v2252_v35 = vadd.f32 1e-05, %v2238_v12 }
 0x480   : > { %v2214_v62 = vsel %vm2213_vm5, %v2185_v13, %v2212_v4  ;;  %3045 = vrcp.f32 %v2247_v41 }
 0x481   : > { %v2217_v3 = vsel %vm2215_vm6, %v2216_v50, %v2214_v62  ;;  %v3042_v48 = vpop.eup %3041  ;;  %v3137_v50 = vld [vmem:[#allocation7 + $0x6] sm:$0x1]  ;;  %v2376_v62 = vpop.permute.xlu1 %2375 }
 0x482   : > { %v2249_v31 = vadd.f32 1e-05, %v2217_v3  ;;  %v2226_v33 = vmul.f32 %v3042_v48, %v2187_v60 }
 0x484   : > { %3047 = vrcp.f32 %v2249_v31  ;;  %v2228_v26 = vsel %vm2227_vm10, %v2187_v60, %v2226_v33  ;;  %v2255_v33 = vsub.f32 %v4664_v43, %v4868_v10 }
 0x485   : > { %v3044_v51 = vpop.eup %3043  ;;  %3049 = vrcp.f32 %v2250_v21  ;;  %v2231_v52 = vsel %vm2229_vm11, %v2230_v24, %v2228_v26  ;;  %v2384_v3 = vpop.permute.xlu1 %2383  ;;  %v2254_v21 = vsub.f32 %v4657_v63, %v4868_v10 }
 0x486   : > { %v2240_v13 = vmul.f32 %v3044_v51, %v2189_v6  ;;  %v2251_v18 = vadd.f32 1e-05, %v2231_v52  ;;  %v2392_v51 = vpop.permute.xlu0 %2391  ;;  %v2258_v52 = vsub.f32 %v4693_v42, %v4870_v47 }
 0x487   : > { %v2397_v63 = vrot.slane %v2392_v51, %v3921_v2  ;;  %v2257_v51 = vsub.f32 %v4685_v37, %v4882_v19  ;;  %v2260_v37 = vsub.f32 %v4707_v0, %v4885_v14  ;;  %v2262_v0 = vsub.f32 %v4727_v27, %v4876_v5 }
 0x488   : > { %v2242_v55 = vsel %vm2241_vm13, %v2189_v6, %v2240_v13  ;;  %3051 = vrcp.f32 %v2251_v18  ;;  %v2259_v18 = vsub.f32 %v4704_v25, %v4870_v47  ;;  %v2264_v27 = vsub.f32 %v4745_v45, %v4891_v11 }
 0x489   : > { %v2245_v61 = vsel %vm2243_vm1, %v2244_v28, %v2242_v55  ;;  %3053 = vrcp.f32 %v2252_v35  ;;  %v4916_v48 = vpop.permute.xlu1 %2399 }
 0x48a   : > { %v3046_v20 = vpop.eup %3045  ;;  %v2253_v60 = vadd.f32 1e-05, %v2245_v61 }
 0x48b   : > { %v2273_v40 = vmul.f32 %v4853_v36, %v3046_v20 }
 0x48c   : > { %3055 = vrcp.f32 %v2253_v60 }
 0x48d   : > { %2297 = vperm.xlu0 %2990, %v2273_v40  }
 0x48e   : > { %v3048_v59 = vpop.eup %3047 }
 0x48f   : > { %v2277_v46 = vmul.f32 %v4856_v9, %v3048_v59  ;;  %v3050_v49 = vpop.eup %3049 }
 0x490   : > { %v2279_v6 = vmul.f32 %v4859_v23, %v3050_v49  ;;  %v4918_v23 = vpop.permute.xlu1 %2407 }
 0x491   : > { %2315 = vperm.xlu1 %2989, %v2277_v46   ;;  %2992 = vset.pattern.permute.xlu0 %v3352_v58 }
 0x492   : > { %2431 = vperm.xlu0 %2992, %v3136_v38   ;;  %v3052_v4 = vpop.eup %3051 }
 0x493   : > { %v2281_v36 = vmul.f32 %v4865_v34, %v3052_v4  ;;  %v3054_v41 = vpop.eup %3053  ;;  %v2381_v34 = vrot.slane %v2376_v62, %v3921_v2 }
 0x494   : > { %v2283_v54 = vmul.f32 %v3137_v50, %v3054_v41  ;;  %v2416_v41 = vpop.permute.xlu0 %2415 }
 0x495   : > { %2324 = vperm.xlu1 %2989, %v2279_v6  }
 0x496   : > { %v3056_v56 = vpop.eup %3055 }
 0x497   : > { %v2285_v9 = vmul.f32 %v3136_v38, %v3056_v56 }
 0x499   : > { %2333 = vperm.xlu1 %2989, %v2281_v36  }
 0x49d   : > { %2342 = vperm.xlu1 %2989, %v2283_v54  }
 0x4a1   : > { %2351 = vperm.xlu1 %2989, %v2285_v9  }
 0x4a5   : > { %2991 = vset.pattern.permute.xlu1 %v3352_v58 }
 0x4a6   : > { %2423 = vperm.xlu1 %2991, %v3137_v50  }
 0x4e9   : > { %v2289_v31 = vpop.permute.xlu1 %2288 }
 0x4ea   : > { %v2294_v22 = vrot.slane %v2289_v31, %v3921_v2 }
 0x4ec   : > { %v2358_v24 = vmul.f32 %v2294_v22, %v2254_v21  ;;  %v2359_v58 = vmul.f32 %v2294_v22, %v2255_v33  ;;  %v3138_v22 = vld [vmem:[%s3586_s6] sm:$0xf] }
 0x4ed   : > { %v2307_v13 = vpop.permute.xlu1 %2306 }
 0x4ee   : > { %v2438_v32 = vadd.f32 %v2381_v34, %v2358_v24  ;;  %v2439_v26 = vadd.f32 %v2381_v34, %v2359_v58  ;;  %v2312_v12 = vrot.slane %v2307_v13, %v3921_v2  ;;  %v2256_v58 = vsub.f32 %v4679_v8, %v4882_v19 }
 0x4ef   : > { %v2389_v13 = vrot.slane %v2384_v3, %v3921_v2  ;;  %v2261_v3 = vsub.f32 %v4721_v1, %v4885_v14  ;;  %v2263_v1 = vsub.f32 %v4735_v16, %v4876_v5  ;;  %v2265_v16 = vsub.f32 %v4753_v57, %v4891_v11 }
 0x4f0   : > { %v2866_v55 = vmul.f32 -1.442695, %v2438_v32  ;;  %v2867_v43 = vmul.f32 -1.442695, %v2439_v26  ;;  %v2362_v10 = vmul.f32 %v2312_v12, %v2258_v52  ;;  %v2363_v28 = vmul.f32 %v2312_v12, %v2259_v18 }
 0x4f2   : > { %3057 = vpow2.f32 %v2866_v55  ;;  %v2442_v20 = vadd.f32 %v2397_v63, %v2362_v10  ;;  %v2443_v35 = vadd.f32 %v2397_v63, %v2363_v28  ;;  %v3139_v10 = vld [vmem:[%s3586_s6 + $0x8] sm:$0xf] }
 0x4f3   : > { %3059 = vpow2.f32 %v2867_v43  ;;  %v2405_v43 = vrot.slane %v4916_v48, %v3921_v2 }
 0x4f4   : > { %v2870_v40 = vmul.f32 -1.442695, %v2442_v20  ;;  %v2871_v61 = vmul.f32 -1.442695, %v2443_v35 }
 0x4f6   : > { %3061 = vpow2.f32 %v2870_v40 }
 0x4f7   : > { %3063 = vpow2.f32 %v2871_v61 }
 0x4fc   : > { %v3058_v42 = vpop.eup %3057 }
 0x4fd   : > { %v3060_v59 = vpop.eup %3059  ;;  %v2502_v60 = vadd.f32 1.0, %v3058_v42 }
 0x4fe   : > { %v2503_v25 = vadd.f32 1.0, %v3060_v59 }
 0x4ff   : > { %3065 = vrcp.f32 %v2502_v60  ;;  %v2413_v60 = vrot.slane %v4918_v23, %v3921_v2 }
 0x500   : > { %3067 = vrcp.f32 %v2503_v25  ;;  %v3062_v47 = vpop.eup %3061 }
 0x501   : > { %v3064_v46 = vpop.eup %3063  ;;  %v2506_v49 = vadd.f32 1.0, %v3062_v47 }
 0x502   : > { %v2507_v38 = vadd.f32 1.0, %v3064_v46 }
 0x503   : > { %3069 = vrcp.f32 %v2506_v49 }
 0x504   : > { %3071 = vrcp.f32 %v2507_v38 }
 0x509   : > { %v3066_v6 = vpop.eup %3065 }
 0x50a   : > { %v3068_v4 = vpop.eup %3067  ;;  %v2553_v36 = vrot.slane %v3066_v6, %v3921_v2 }
 0x50b   : > { %v2557_v50 = vrot.slane %v3068_v4, %v3921_v2 }
 0x50c   : > { %v2298_v33 = vpop.permute.xlu0 %2297 }
 0x50d   : > { %v2630_v54 = vcombine.low %v2553_v36, %v2557_v50  ;;  %v3070_v56 = vpop.eup %3069  ;;  %v2303_v32 = vrot.slane %v2298_v33, %v3921_v2  ;;  %v2421_v36 = vrot.slane %v2416_v41, %v3921_v2  ;;  %v2269_v41 = vsub.f32 %v4818_v15, %v4896_v53 }
 0x50e   : > { %v3072_v9 = vpop.eup %3071  ;;  %v2569_v31 = vrot.slane %v3070_v56, %v3921_v2  ;;  %v2267_v15 = vsub.f32 %v4768_v44, %v4879_v39 }
 0x50f   : > { %v2637_v62 = vrot.slane %v2630_v54, %v5138_v7  ;;  %v2573_v21 = vrot.slane %v3072_v9, %v3921_v2  ;;  %v2360_v52 = vmul.f32 %v2303_v32, %v2256_v58  ;;  %v2361_v18 = vmul.f32 %v2303_v32, %v2257_v51 }
 0x510   : > { %v2316_v19 = vpop.permute.xlu1 %2315 }
 0x511   : > { %v2702_v24 = vmul.f32 %v3138_v22, %v2637_v62  ;;  %v2646_v26 = vcombine.low %v2569_v31, %v2573_v21  ;;  %v2440_v12 = vadd.f32 %v2389_v13, %v2360_v52  ;;  %v2441_v63 = vadd.f32 %v2389_v13, %v2361_v18  ;;  %v2432_v31 = vpop.permute.xlu0 %2431 }
 0x512   : > { %v2321_v55 = vrot.slane %v2316_v19, %v3921_v2 }
 0x513   : > { %2712 = vst.msk [vmem:[%s4950_s30] sm:$0xf] %vm4937_vm9, %v2702_v24  ;;  %v2653_v8 = vrot.slane %v2646_v26, %v5138_v7  ;;  %v2868_v20 = vmul.f32 -1.442695, %v2440_v12  ;;  %v2869_v35 = vmul.f32 -1.442695, %v2441_v63  ;;  %v2268_v24 = vsub.f32 %v4816_v17, %v4896_v53 }
 0x514   : > { %v2364_v40 = vmul.f32 %v2321_v55, %v2260_v37  ;;  %v2365_v61 = vmul.f32 %v2321_v55, %v2261_v3  ;;  %v2325_v14 = vpop.permute.xlu1 %2324  ;;  %v2437_v26 = vrot.slane %v2432_v31, %v3921_v2  ;;  %v2266_v17 = vsub.f32 %v4760_v29, %v4879_v39 }
 0x515   : > { %v2704_v28 = vmul.f32 %v3139_v10, %v2653_v8  ;;  %3073 = vpow2.f32 %v2868_v20  ;;  %v2330_v48 = vrot.slane %v2325_v14, %v3921_v2 }
 0x516   : > { %v2444_v42 = vadd.f32 %v2405_v43, %v2364_v40  ;;  %v2445_v59 = vadd.f32 %v2405_v43, %v2365_v61  ;;  %3075 = vpow2.f32 %v2869_v35 }
 0x517   : > { %2714 = vst.msk [vmem:[%s4950_s30 + $0x8] sm:$0xf] %vm4937_vm9, %v2704_v28  ;;  %v2366_v46 = vmul.f32 %v2330_v48, %v2262_v0  ;;  %v2367_v49 = vmul.f32 %v2330_v48, %v2263_v1 }
 0x518   : > { %v2872_v25 = vmul.f32 -1.442695, %v2444_v42  ;;  %v2873_v47 = vmul.f32 -1.442695, %v2445_v59  ;;  %v2334_v5 = vpop.permute.xlu1 %2333 }
 0x519   : > { %v2446_v38 = vadd.f32 %v2413_v60, %v2366_v46  ;;  %v2447_v6 = vadd.f32 %v2413_v60, %v2367_v49  ;;  %v2339_v4 = vrot.slane %v2334_v5, %v3921_v2 }
 0x51a   : > { %3077 = vpow2.f32 %v2872_v25 }
 0x51b   : > { %3079 = vpow2.f32 %v2873_v47  ;;  %v2874_v23 = vmul.f32 -1.442695, %v2446_v38  ;;  %v2875_v50 = vmul.f32 -1.442695, %v2447_v6  ;;  %v2368_v54 = vmul.f32 %v2339_v4, %v2264_v27 }
 0x51c   : > { %v2369_v56 = vmul.f32 %v2339_v4, %v2265_v16  ;;  %v2343_v9 = vpop.permute.xlu1 %2342 }
 0x51d   : > { %3081 = vpow2.f32 %v2874_v23  ;;  %v2448_v62 = vadd.f32 %v2421_v36, %v2368_v54  ;;  %v2348_v13 = vrot.slane %v2343_v9, %v3921_v2  ;;  %v3140_v23 = vld [vmem:[%s3586_s6 + $0x4] sm:$0xf] }
 0x51e   : > { %v2449_v45 = vadd.f32 %v2421_v36, %v2369_v56  ;;  %3083 = vpow2.f32 %v2875_v50 }
 0x51f   : > { %v3074_v57 = vpop.eup %3073  ;;  %v2876_v11 = vmul.f32 -1.442695, %v2448_v62  ;;  %v2370_v55 = vmul.f32 %v2348_v13, %v2266_v17  ;;  %v2371_v43 = vmul.f32 %v2348_v13, %v2267_v15 }
 0x520   : > { %v3076_v21 = vpop.eup %3075  ;;  %v2504_v33 = vadd.f32 1.0, %v3074_v57  ;;  %v2877_v22 = vmul.f32 -1.442695, %v2449_v45  ;;  %v2352_v58 = vpop.permute.xlu1 %2351 }
 0x521   : > { %v2505_v51 = vadd.f32 1.0, %v3076_v21  ;;  %3085 = vpow2.f32 %v2876_v11  ;;  %v2357_v32 = vrot.slane %v2352_v58, %v3921_v2 }
 0x522   : > { %3087 = vrcp.f32 %v2504_v33 }
 0x523   : > { %3089 = vrcp.f32 %v2505_v51  ;;  %v2372_v18 = vmul.f32 %v2357_v32, %v2268_v24  ;;  %v2373_v8 = vmul.f32 %v2357_v32, %v2269_v41 }
 0x524   : > { %v3078_v52 = vpop.eup %3077  ;;  %3091 = vpow2.f32 %v2877_v22  ;;  %v3141_v22 = vld [vmem:[%s3586_s6 + $0xc] sm:$0xf] }
 0x525   : > { %v3080_v37 = vpop.eup %3079  ;;  %v2508_v19 = vadd.f32 1.0, %v3078_v52  ;;  %v2452_v12 = vadd.f32 %v2437_v26, %v2372_v18  ;;  %v2453_v63 = vadd.f32 %v2437_v26, %v2373_v8  ;;  %v2424_v3 = vpop.permute.xlu1 %2423  ;;  %v3142_v18 = vld [vmem:[%s3586_s6 + $0x10] sm:$0xf] }
 0x526   : > { %v2509_v53 = vadd.f32 1.0, %v3080_v37  ;;  %v2429_v10 = vrot.slane %v2424_v3, %v3921_v2 }
 0x527   : > { %3093 = vrcp.f32 %v2508_v19  ;;  %v3082_v28 = vpop.eup %3081  ;;  %v2880_v20 = vmul.f32 -1.442695, %v2452_v12  ;;  %v2881_v61 = vmul.f32 -1.442695, %v2453_v63 }
 0x528   : > { %3095 = vrcp.f32 %v2509_v53  ;;  %v3084_v35 = vpop.eup %3083  ;;  %v2510_v40 = vadd.f32 1.0, %v3082_v28  ;;  %v2450_v0 = vadd.f32 %v2429_v10, %v2370_v55  ;;  %v2451_v29 = vadd.f32 %v2429_v10, %v2371_v43  ;;  %v3143_v53 = vld [vmem:[%s3586_s6 + $0x14] sm:$0xf] }
 0x529   : > { %v2511_v1 = vadd.f32 1.0, %v3084_v35  ;;  %3097 = vpow2.f32 %v2880_v20 }
 0x52a   : > { %3099 = vrcp.f32 %v2510_v40  ;;  %v2878_v44 = vmul.f32 -1.442695, %v2450_v0  ;;  %v2879_v14 = vmul.f32 -1.442695, %v2451_v29 }
 0x52b   : > { %v3086_v39 = vpop.eup %3085  ;;  %3101 = vrcp.f32 %v2511_v1 }
 0x52c   : > { %v3088_v42 = vpop.eup %3087  ;;  %v2512_v59 = vadd.f32 1.0, %v3086_v39  ;;  %3103 = vpow2.f32 %v2881_v61 }
 0x52d   : > { %v3090_v48 = vpop.eup %3089  ;;  %v2561_v60 = vrot.slane %v3088_v42, %v3921_v2  ;;  %3105 = vpow2.f32 %v2878_v44 }
 0x52e   : > { %v3092_v25 = vpop.eup %3091  ;;  %v2565_v47 = vrot.slane %v3090_v48, %v3921_v2  ;;  %3107 = vrcp.f32 %v2512_v59 }
 0x52f   : > { %v2513_v46 = vadd.f32 1.0, %v3092_v25  ;;  %3109 = vpow2.f32 %v2879_v14 }
 0x530   : > { %v2638_v27 = vcombine.low %v2561_v60, %v2565_v47 }
 0x531   : > { %v3094_v49 = vpop.eup %3093  ;;  %3111 = vrcp.f32 %v2513_v46 }
 0x532   : > { %v3096_v16 = vpop.eup %3095  ;;  %v2577_v5 = vrot.slane %v3094_v49, %v3921_v2  ;;  %v2645_v38 = vrot.slane %v2638_v27, %v5138_v7 }
 0x533   : > { %v2581_v6 = vrot.slane %v3096_v16, %v3921_v2  ;;  %v3098_v4 = vpop.eup %3097 }
 0x534   : > { %v3100_v36 = vpop.eup %3099  ;;  %v2703_v50 = vmul.f32 %v3140_v23, %v2645_v38  ;;  %v2516_v56 = vadd.f32 1.0, %v3098_v4 }
 0x535   : > { %v2654_v54 = vcombine.low %v2577_v5, %v2581_v6  ;;  %v3102_v9 = vpop.eup %3101  ;;  %v2585_v62 = vrot.slane %v3100_v36, %v3921_v2 }
 0x536   : > { %v3104_v45 = vpop.eup %3103  ;;  %2713 = vst.msk [vmem:[%s4950_s30 + $0x4] sm:$0xf] %vm4937_vm9, %v2703_v50  ;;  %v2589_v57 = vrot.slane %v3102_v9, %v3921_v2  ;;  %3113 = vrcp.f32 %v2516_v56 }
 0x537   : > { %v2661_v31 = vrot.slane %v2654_v54, %v5138_v7  ;;  %v3106_v11 = vpop.eup %3105  ;;  %v2517_v21 = vadd.f32 1.0, %v3104_v45 }
 0x538   : > { %v3108_v33 = vpop.eup %3107  ;;  %v2662_v41 = vcombine.low %v2585_v62, %v2589_v57  ;;  %v2514_v58 = vadd.f32 1.0, %v3106_v11 }
 0x539   : > { %v2705_v24 = vmul.f32 %v3141_v22, %v2661_v31  ;;  %v3110_v51 = vpop.eup %3109  ;;  %3115 = vrcp.f32 %v2517_v21  ;;  %v2593_v26 = vrot.slane %v3108_v33, %v3921_v2 }
 0x53a   : > { %v2669_v32 = vrot.slane %v2662_v41, %v5138_v7  ;;  %v2515_v13 = vadd.f32 1.0, %v3110_v51  ;;  %3117 = vrcp.f32 %v2514_v58 }
 0x53b   : > { %2715 = vst.msk [vmem:[%s4950_s30 + $0xc] sm:$0xf] %vm4937_vm9, %v2705_v24  ;;  %v3112_v52 = vpop.eup %3111 }
 0x53c   : > { %v2706_v8 = vmul.f32 %v3142_v18, %v2669_v32  ;;  %v2597_v37 = vrot.slane %v3112_v52, %v3921_v2  ;;  %3119 = vrcp.f32 %v2515_v13 }
 0x53e   : > { %2716 = vst.msk [vmem:[%s4950_s30 + $0x10] sm:$0xf] %vm4937_vm9, %v2706_v8  ;;  %v2670_v19 = vcombine.low %v2593_v26, %v2597_v37 }
 0x540   : > { %v3114_v17 = vpop.eup %3113  ;;  %v2677_v15 = vrot.slane %v2670_v19, %v5138_v7 }
 0x541   : > { %v2609_v63 = vrot.slane %v3114_v17, %v3921_v2 }
 0x542   : > { %v2707_v12 = vmul.f32 %v3143_v53, %v2677_v15 }
 0x543   : > { %v3116_v3 = vpop.eup %3115 }
 0x544   : > { %v3118_v55 = vpop.eup %3117  ;;  %2717 = vst.msk [vmem:[%s4950_s30 + $0x14] sm:$0xf] %vm4937_vm9, %v2707_v12  ;;  %v2613_v43 = vrot.slane %v3116_v3, %v3921_v2 }
 0x545   : > { %v2601_v10 = vrot.slane %v3118_v55, %v3921_v2 }
 0x546   : > { %v3120_v28 = vpop.eup %3119  ;;  %v2686_v20 = vcombine.low %v2609_v63, %v2613_v43 }
 0x547   : > { %v2605_v35 = vrot.slane %v3120_v28, %v3921_v2  ;;  %v3144_v2 = vld [vmem:[%s3586_s6 + $0x18] sm:$0xf] }
 0x548   : > { %v2693_v40 = vrot.slane %v2686_v20, %v5138_v7 }
 0x549   : > { %v2678_v61 = vcombine.low %v2601_v10, %v2605_v35 }
 0x54a   : > { %v2709_v0 = vmul.f32 %v4800_v30, %v2693_v40 }
 0x54b   : > { %v2685_v29 = vrot.slane %v2678_v61, %v5138_v7 }
 0x54c   : > { %2719 = vst.msk [vmem:[%s4950_s30 + $0x1c] sm:$0xf] %vm4937_vm9, %v2709_v0 }
 0x54d   : > { %v2708_v1 = vmul.f32 %v3144_v2, %v2685_v29 }
 0x54f   : > { %2718 = vst.msk [vmem:[%s4950_s30 + $0x18] sm:$0xf] %vm4937_vm9, %v2708_v1 }
 0x550   : > { %3273 = shalt.err (!%p3270_p4)
}
 0x551   : > { %s3274_s29 = scalar_lea.hbm %s5035_s13, 512  ;;  %s3278_s6 = scalar_lea.hbm %s5091_s4, 1024 }
 0x552   : > { %p3275_p2 = scmp.ne.s32.totalorder %s5035_s13, %s3274_s29  ;;  %p3279_p6 = scmp.lt.u32.totalorder %s5035_s13, %s5091_s4 }
 0x553   : > { %p3280_p9 = scmp.lt.u32.totalorder %s3278_s6, %s3274_s29  ;;  %p3282_p12 = scmp.lt.u32.totalorder %s3274_s29, %s5035_s13 }
 0x554   : > { %p3276_p0 = pnand %p3275_p2, %p5159_p13 }
 0x555   : > { %p3281_p11 = por %p3280_p9, %p3279_p6 }
 0x556   : > { %p3277_p1 = pneg %p3276_p0 }
 0x557   : > { %p3283_p7 = por %p3282_p12, %p3281_p11 }
 0x559   : > { %p3284_p8 = pnand %p3283_p7, %p3277_p1 }
 0x55b   : > { %3287 = shalt.err (!%p3284_p8)
}
 0x55c   : > { %s3355_s5 = smov 64   ;;  %s3356_s25 = smov 4  }
 0x55d   : > { %2906 = dma.vmem_to_hbm [thread:$0]  (%p5159_p13), %s5037_s10, 512, %s5035_s13, %s5045_s19, %s3355_s5, %s3355_s5, %s3356_s25  }
 0x55e PF: > { %s2750_s30 = sand.u32 1, %s3326_s15   ;;  %p5160_p5 = scmp.ne.s32.totalorder %s5111_s28, 0 }
 0x55f   : > { %p5161_p10 = scmp.ge.s32.totalorder %s3338_s18, 2  ;;  %s2751_s20 = scalar_lea.sflag [#allocation4], %s2750_s30 }
 0x561   : > { %p2923_p3 = pnand %p5161_p10, %p5160_p5 }
 0x563   : > { %3321 = dma.done.wait (!%p2923_p3), %s2751_s20, 512  }
 0x564   : > { %3323 = vsyncadd (!%p2923_p3), %s2751_s20, 4294966784  ;;  %p17_p4 = scmp.ge.s32.totalorder %s3407_s21, 4   ;;  %s5162_s15 = smov %s3330_s16 }
 0x565   : > { %s5163_s16 = smov %s3334_s17  ;;  %s5164_s17 = smov %s3419_s24 }
 0x566   : > { %s5165_s18 = smov %s3407_s21  ;;  %19 = sbr.rel (!%p17_p4) target bundleno = 8 (0x8), region = 93 }
 0x56d   :  { %2756 = vsyncpa [#allocation3], 1 }
 0x56e   :  { %2758 = vsyncpa [#allocation3 + $0x1], 1 }
 0x56f   :  { %2759 = vsyncpa [#allocation8], 1 }
 0x570   :  { %2760 = vsyncpa [#allocation4], 1 }
 0x571   :  { %2762 = vsyncpa [#allocation4 + $0x1], 1 }
 0x572   :  { %2763 = vsyncpa [#allocation5], 1 }
 0x573   :  { %2765 = vsyncpa [#allocation5 + $0x1], 1 }

</bundles_post_ra>
